<compile_context>
chip_gen: v7x
topology: tpu7x:2x2x1
jax: 0.10.0
libtpu: 0.0.40
codegen_flags: <defaults>
</compile_context>

<pallas_src>
import jax
import jax.numpy as jnp
from jax import lax
from jax.experimental import pallas as pl
from jax.experimental.pallas import tpu as pltpu


def _round_up(x, m):
    return ((x + m - 1) // m) * m


def rnn_model_kernel(ids_ref,     # VMEM (1, T*TB, 1) int32, t-major rows
                     emb_ref,     # VMEM (Vp, Hp)
                     wih_ref,     # VMEM (Hp, Hp)   (in, out) layout
                     whh_ref,     # VMEM (Hp, Hp)
                     b_ref,       # VMEM (1, Hp)    b_ih + b_hh, f32
                     wfc_ref,     # VMEM (Hp, Op)
                     bfc_ref,     # VMEM (1, Op)    f32
                     out_ref,     # VMEM (TB, Op)   this batch block
                     xw_ref):     # VMEM (T*TB, Hp) f32 scratch (hoisted projection)
    TB = out_ref.shape[0]
    TTB, Hp = xw_ref.shape
    T = TTB // TB
    Vp = emb_ref.shape[0]

    # ---- 1) Vectorized embedding gather: one-hot built on the VPU, gathered on
    #         the MXU (idle in this phase).  Out-of-range ids yield an all-zero
    #         row (PyTorch nn.Embedding would raise; documented contract:
    #         ids must lie in [0, V)).
    ids_col = ids_ref[0]                                            # (T*TB, 1) int32
    iota_v = lax.broadcasted_iota(jnp.int32, (TTB, Vp), 1)
    one_hot = (iota_v == ids_col).astype(emb_ref.dtype)             # (T*TB, Vp)
    x = jnp.dot(one_hot, emb_ref[...],
                preferred_element_type=jnp.float32)                 # (T*TB, Hp) f32

    # ---- 2) Hoisted input projection + bias for ALL timesteps, stored to VMEM
    #         scratch so it is not live in vregs across the whole recurrence.
    xw_ref[...] = (jnp.dot(x.astype(wih_ref.dtype), wih_ref[...],
                           preferred_element_type=jnp.float32)
                   + b_ref[...])

    # ---- 3) Serial recurrence: only h @ W_hh (MXU) + add (VPU) + tanh (EUP) on
    #         the latency-critical path.  W_hh loaded once.
    whh = whh_ref[...]
    h = jnp.zeros((TB, Hp), jnp.float32)

    if T <= 32:
        # Small static T: fully unrolled so the LLO scheduler can overlap the
        # MXU push/pop with the previous step's add/tanh.
        for t in range(T):
            h = jnp.tanh(xw_ref[pl.ds(t * TB, TB), :]
                         + jnp.dot(h.astype(whh.dtype), whh,
                                   preferred_element_type=jnp.float32))
    else:
        # Large T: partial unroll to keep code size / vreg pressure bounded.
        def step(t, h):
            off = pl.multiple_of(t * TB, 8)
            return jnp.tanh(xw_ref[pl.ds(off, TB), :]
                            + jnp.dot(h.astype(whh.dtype), whh,
                                      preferred_element_type=jnp.float32))
        h = lax.fori_loop(0, T, step, h, unroll=8)

    # ---- 4) Final Linear on the last hidden state (lane-dense Op-wide store).
    out_ref[...] = (jnp.dot(h.astype(wfc_ref.dtype), wfc_ref[...],
                            preferred_element_type=jnp.float32)
                    + bfc_ref[...]).astype(out_ref.dtype)


def prepare_rnn_params(emb, w_ih, w_hh, b_ih, b_hh, w_fc, b_fc,
                       *, param_dtype=jnp.float32):
    """One-time parameter prep (hoisted out of the per-call path).

    Zero-pads to TPU-friendly geometry: vocab/hidden/output -> multiples of 128
    lanes.  Exact: padded hidden units stay 0 through tanh and contribute
    nothing; padded vocab rows are never selected.  param_dtype=jnp.bfloat16
    halves the VMEM/HBM footprint of the matmul operands (accumulation stays
    f32 in-kernel).
    """
    V, H = emb.shape
    O = w_fc.shape[1]
    Vp = _round_up(V, 128)
    Hp = _round_up(H, 128)
    Op = _round_up(O, 128)

    emb_p = jnp.zeros((Vp, Hp), param_dtype).at[:V, :H].set(emb.astype(param_dtype))
    wih_p = jnp.zeros((Hp, Hp), param_dtype).at[:H, :H].set(w_ih.astype(param_dtype))
    whh_p = jnp.zeros((Hp, Hp), param_dtype).at[:H, :H].set(w_hh.astype(param_dtype))
    wfc_p = jnp.zeros((Hp, Op), param_dtype).at[:H, :O].set(w_fc.astype(param_dtype))
    b_p = jnp.zeros((1, Hp), jnp.float32).at[0, :H].set((b_ih + b_hh).astype(jnp.float32))
    bfc_p = jnp.zeros((1, Op), jnp.float32).at[0, :O].set(b_fc.astype(jnp.float32))

    return dict(emb=emb_p, w_ih=wih_p, w_hh=whh_p, b=b_p, w_fc=wfc_p, b_fc=bfc_p,
                dims=(V, H, O))


def rnn_model_forward(ids, params, *, block_b=None):
    """ids: (B, T) int32 token ids. params: output of prepare_rnn_params.
    Returns logits (B, O) float32."""
    B, T = ids.shape
    V, H, O = params["dims"]
    Vp, Hp = params["emb"].shape
    Op = params["w_fc"].shape[1]

    # Larger batch tiles fill MXU rows and amortize per-step overhead; batch is
    # padded to a multiple of 8 sublanes in any case.
    if block_b is None:
        block_b = min(_round_up(B, 8), 256)
    block_b = _round_up(block_b, 8)
    Bp = _round_up(B, block_b)
    nb = Bp // block_b

    # Per-call input prep is only this tiny ids re-layout:
    # ids_col[i, t*TB + b, 0] = ids[i*TB + b, t]  (t-major per block), so step t
    # later reads a contiguous (TB, Hp) slab of the projected inputs.
    ids_pad = jnp.zeros((Bp, T), jnp.int32).at[:B].set(ids.astype(jnp.int32))
    ids_col = (ids_pad.reshape(nb, block_b, T)
               .transpose(0, 2, 1)
               .reshape(nb, T * block_b, 1))

    def build(single_buffer_invariants):
        def inv(shape):
            kwargs = {}
            if single_buffer_invariants:
                # Grid-invariant operand (index map is constant): no point
                # double-buffering it.
                kwargs["pipeline_mode"] = pl.Buffered(1)
            return pl.BlockSpec(shape, lambda i, _s=len(shape): (0,) * _s, **kwargs)

        grid_spec = pltpu.PrefetchScalarGridSpec(
            num_scalar_prefetch=0,
            grid=(nb,),                                   # parallel over batch blocks
            in_specs=[
                pl.BlockSpec((1, T * block_b, 1), lambda i: (i, 0, 0)),   # ids
                inv((Vp, Hp)),                            # embedding table (toy V in VMEM)
                inv((Hp, Hp)),                            # W_ih
                inv((Hp, Hp)),                            # W_hh
                inv((1, Hp)),                             # b_ih + b_hh
                inv((Hp, Op)),                            # W_fc
                inv((1, Op)),                             # b_fc
            ],
            out_specs=pl.BlockSpec((block_b, Op), lambda i: (i, 0)),
            scratch_shapes=[pltpu.VMEM((T * block_b, Hp), jnp.float32)],
        )
        return pl.pallas_call(
            rnn_model_kernel,
            out_shape=jax.ShapeDtypeStruct((Bp, Op), jnp.float32),
            grid_spec=grid_spec,
            compiler_params=pltpu.CompilerParams(
                dimension_semantics=("parallel",)),       # batch blocks split across TCs
        )

    args = (ids_col, params["emb"], params["w_ih"], params["w_hh"],
            params["b"], params["w_fc"], params["b_fc"])
    try:
        out_p = build(True)(*args)
    except Exception:
        # pipeline_mode=pl.Buffered(1) not supported by this JAX/Pallas version;
        # fall back to default double-buffering (numerically identical).
        out_p = build(False)(*args)

    return out_p[:B, :O]


def rnn_model_reference(ids, emb, w_ih, w_hh, bias, w_fc, b_fc):
    """Pure-JAX reference matching PyTorch semantics."""
    x = emb[ids]                                             # (B, T, H)
    B, T, H = x.shape

    def scan_step(h, x_t):
        return jnp.tanh(x_t @ w_ih + h @ w_hh + bias), None

    h_last, _ = lax.scan(scan_step, jnp.zeros((B, H), jnp.float32),
                         jnp.swapaxes(x, 0, 1))
    return h_last @ w_fc + b_fc


if __name__ == "__main__":
    # Small shapes consistent with the module:
    #   input_size (vocab) = 16, hidden_size = 32, output_size = 4
    #   batch = 2, seq = 8
    V, H, O = 16, 32, 4
    B, T = 2, 8

    key = jax.random.PRNGKey(0)
    k_ids, k_emb, k_wih, k_whh, k_bih, k_bhh, k_wfc, k_bfc = jax.random.split(key, 8)

    ids = jax.random.randint(k_ids, (B, T), 0, V, dtype=jnp.int32)

    # Deterministic init mimicking PyTorch defaults:
    #   Embedding ~ N(0, 1); RNN / Linear ~ U(-1/sqrt(H), 1/sqrt(H))
    emb = jax.random.normal(k_emb, (V, H), dtype=jnp.float32)
    s = 1.0 / jnp.sqrt(jnp.float32(H))
    w_ih = jax.random.uniform(k_wih, (H, H), jnp.float32, -s, s)   # (in, out) layout
    w_hh = jax.random.uniform(k_whh, (H, H), jnp.float32, -s, s)
    b_ih = jax.random.uniform(k_bih, (H,), jnp.float32, -s, s)
    b_hh = jax.random.uniform(k_bhh, (H,), jnp.float32, -s, s)
    w_fc = jax.random.uniform(k_wfc, (H, O), jnp.float32, -s, s)
    b_fc = jax.random.uniform(k_bfc, (O,), jnp.float32, -s, s)

    # One-time parameter prep (padding hoisted out of the per-call path).
    params = prepare_rnn_params(emb, w_ih, w_hh, b_ih, b_hh, w_fc, b_fc,
                                param_dtype=jnp.float32)

    y_pred = rnn_model_forward(ids, params)
    y_pred = jax.block_until_ready(y_pred)

    y_ref = rnn_model_reference(ids, emb, w_ih, w_hh, b_ih + b_hh, w_fc, b_fc)
    assert y_pred.shape == (B, O)
    assert jnp.allclose(y_pred, y_ref, atol=1e-4, rtol=1e-4), "mismatch vs reference"

    print("KERNEL_OK")
</pallas_src>

<mosaic_0001>
module attributes {stable_mosaic.version = 11 : i64} {
  func.func @rnn_model_kernel(%arg0: i32, %arg1: memref<1x64x1xi32, #tpu.memory_space<vmem>>, %arg2: memref<128x128xf32, #tpu.memory_space<vmem>>, %arg3: memref<128x128xf32, #tpu.memory_space<vmem>>, %arg4: memref<128x128xf32, #tpu.memory_space<vmem>>, %arg5: memref<1x128xf32, #tpu.memory_space<vmem>>, %arg6: memref<128x128xf32, #tpu.memory_space<vmem>>, %arg7: memref<1x128xf32, #tpu.memory_space<vmem>>, %arg8: memref<8x128xf32, #tpu.memory_space<vmem>>, %arg9: memref<64x128xf32, #tpu.memory_space<vmem>>) attributes {dimension_semantics = [#tpu.dimension_semantics<parallel>], iteration_bounds = array<i64: 1>, scalar_prefetch = 0 : i64, scratch_operands = 1 : i64, tpu.core_type = #tpu.core_type<tc>, window_params = [{transform_indices = @transform_0, window_bounds = array<i64: 1, 64, 1>}, {pipeline_mode = #tpu.pipeline_mode<synchronous>, transform_indices = @transform_1, window_bounds = array<i64: 128, 128>}, {pipeline_mode = #tpu.pipeline_mode<synchronous>, transform_indices = @transform_2, window_bounds = array<i64: 128, 128>}, {pipeline_mode = #tpu.pipeline_mode<synchronous>, transform_indices = @transform_3, window_bounds = array<i64: 128, 128>}, {pipeline_mode = #tpu.pipeline_mode<synchronous>, transform_indices = @transform_4, window_bounds = array<i64: 1, 128>}, {pipeline_mode = #tpu.pipeline_mode<synchronous>, transform_indices = @transform_5, window_bounds = array<i64: 128, 128>}, {pipeline_mode = #tpu.pipeline_mode<synchronous>, transform_indices = @transform_6, window_bounds = array<i64: 1, 128>}, {transform_indices = @transform_7, window_bounds = array<i64: 8, 128>}]} {
    %c0 = arith.constant 0 : index
    %c0_0 = arith.constant 0 : index
    %c0_1 = arith.constant 0 : index
    %0 = vector.load %arg1[%c0, %c0_0, %c0_1] : memref<1x64x1xi32, #tpu.memory_space<vmem>>, vector<1x64x1xi32>
    %1 = vector.shape_cast %0 : vector<1x64x1xi32> to vector<64x1xi32>
    %2 = tpu.iota {dimensions = array<i32: 1>} : vector<64x128xi32>
    %3 = vector.broadcast %1 : vector<64x1xi32> to vector<64x128xi32>
    %4 = arith.cmpi eq, %2, %3 : vector<64x128xi32>
    %5 = arith.extui %4 : vector<64x128xi1> to vector<64x128xi32>
    %6 = arith.sitofp %5 : vector<64x128xi32> to vector<64x128xf32>
    %c0_2 = arith.constant 0 : index
    %c0_3 = arith.constant 0 : index
    %7 = vector.load %arg2[%c0_2, %c0_3] : memref<128x128xf32, #tpu.memory_space<vmem>>, vector<128x128xf32>
    %cst = arith.constant dense<0.000000e+00> : vector<64x128xf32>
    %8 = tpu.matmul %6, %7, %cst {dimension_numbers = #tpu.dot_dimension_numbers<[1], [0], [0], [1], [0, 0, 1, 1], [], []>} : vector<64x128xf32>, vector<128x128xf32>, vector<64x128xf32> -> vector<64x128xf32>
    %c0_4 = arith.constant 0 : index
    %c0_5 = arith.constant 0 : index
    %9 = vector.load %arg3[%c0_4, %c0_5] : memref<128x128xf32, #tpu.memory_space<vmem>>, vector<128x128xf32>
    %cst_6 = arith.constant dense<0.000000e+00> : vector<64x128xf32>
    %10 = tpu.matmul %8, %9, %cst_6 {dimension_numbers = #tpu.dot_dimension_numbers<[1], [0], [0], [1], [0, 0, 1, 1], [], []>} : vector<64x128xf32>, vector<128x128xf32>, vector<64x128xf32> -> vector<64x128xf32>
    %c0_7 = arith.constant 0 : index
    %c0_8 = arith.constant 0 : index
    %11 = vector.load %arg5[%c0_7, %c0_8] : memref<1x128xf32, #tpu.memory_space<vmem>>, vector<1x128xf32>
    %12 = vector.broadcast %11 : vector<1x128xf32> to vector<64x128xf32>
    %13 = arith.addf %10, %12 : vector<64x128xf32>
    %c0_9 = arith.constant 0 : index
    %c0_10 = arith.constant 0 : index
    %14 = vector.load %arg9[%c0_9, %c0_10] : memref<64x128xf32, #tpu.memory_space<vmem>>, vector<64x128xf32>
    tpu.vector_store %arg9[%c0_9, %c0_10], %13 {strides = array<i32>} : memref<64x128xf32, #tpu.memory_space<vmem>>, vector<64x128xf32>,
    %c0_11 = arith.constant 0 : index
    %c0_12 = arith.constant 0 : index
    %15 = vector.load %arg4[%c0_11, %c0_12] : memref<128x128xf32, #tpu.memory_space<vmem>>, vector<128x128xf32>
    %cst_13 = arith.constant 0.000000e+00 : f32
    %16 = vector.broadcast %cst_13 : f32 to vector<8x128xf32>
    %c0_14 = arith.constant 0 : index
    %c0_15 = arith.constant 0 : index
    %17 = vector.load %arg9[%c0_14, %c0_15] : memref<64x128xf32, #tpu.memory_space<vmem>>, vector<8x128xf32>
    %cst_16 = arith.constant dense<0.000000e+00> : vector<8x128xf32>
    %18 = tpu.matmul %16, %15, %cst_16 {dimension_numbers = #tpu.dot_dimension_numbers<[1], [0], [0], [1], [0, 0, 1, 1], [], []>} : vector<8x128xf32>, vector<128x128xf32>, vector<8x128xf32> -> vector<8x128xf32>
    %19 = arith.addf %17, %18 : vector<8x128xf32>
    %20 = math.tanh %19 : vector<8x128xf32>
    %c8 = arith.constant 8 : index
    %c0_17 = arith.constant 0 : index
    %21 = vector.load %arg9[%c8, %c0_17] : memref<64x128xf32, #tpu.memory_space<vmem>>, vector<8x128xf32>
    %cst_18 = arith.constant dense<0.000000e+00> : vector<8x128xf32>
    %22 = tpu.matmul %20, %15, %cst_18 {dimension_numbers = #tpu.dot_dimension_numbers<[1], [0], [0], [1], [0, 0, 1, 1], [], []>} : vector<8x128xf32>, vector<128x128xf32>, vector<8x128xf32> -> vector<8x128xf32>
    %23 = arith.addf %21, %22 : vector<8x128xf32>
    %24 = math.tanh %23 : vector<8x128xf32>
    %c16 = arith.constant 16 : index
    %c0_19 = arith.constant 0 : index
    %25 = vector.load %arg9[%c16, %c0_19] : memref<64x128xf32, #tpu.memory_space<vmem>>, vector<8x128xf32>
    %cst_20 = arith.constant dense<0.000000e+00> : vector<8x128xf32>
    %26 = tpu.matmul %24, %15, %cst_20 {dimension_numbers = #tpu.dot_dimension_numbers<[1], [0], [0], [1], [0, 0, 1, 1], [], []>} : vector<8x128xf32>, vector<128x128xf32>, vector<8x128xf32> -> vector<8x128xf32>
    %27 = arith.addf %25, %26 : vector<8x128xf32>
    %28 = math.tanh %27 : vector<8x128xf32>
    %c24 = arith.constant 24 : index
    %c0_21 = arith.constant 0 : index
    %29 = vector.load %arg9[%c24, %c0_21] : memref<64x128xf32, #tpu.memory_space<vmem>>, vector<8x128xf32>
    %cst_22 = arith.constant dense<0.000000e+00> : vector<8x128xf32>
    %30 = tpu.matmul %28, %15, %cst_22 {dimension_numbers = #tpu.dot_dimension_numbers<[1], [0], [0], [1], [0, 0, 1, 1], [], []>} : vector<8x128xf32>, vector<128x128xf32>, vector<8x128xf32> -> vector<8x128xf32>
    %31 = arith.addf %29, %30 : vector<8x128xf32>
    %32 = math.tanh %31 : vector<8x128xf32>
    %c32 = arith.constant 32 : index
    %c0_23 = arith.constant 0 : index
    %33 = vector.load %arg9[%c32, %c0_23] : memref<64x128xf32, #tpu.memory_space<vmem>>, vector<8x128xf32>
    %cst_24 = arith.constant dense<0.000000e+00> : vector<8x128xf32>
    %34 = tpu.matmul %32, %15, %cst_24 {dimension_numbers = #tpu.dot_dimension_numbers<[1], [0], [0], [1], [0, 0, 1, 1], [], []>} : vector<8x128xf32>, vector<128x128xf32>, vector<8x128xf32> -> vector<8x128xf32>
    %35 = arith.addf %33, %34 : vector<8x128xf32>
    %36 = math.tanh %35 : vector<8x128xf32>
    %c40 = arith.constant 40 : index
    %c0_25 = arith.constant 0 : index
    %37 = vector.load %arg9[%c40, %c0_25] : memref<64x128xf32, #tpu.memory_space<vmem>>, vector<8x128xf32>
    %cst_26 = arith.constant dense<0.000000e+00> : vector<8x128xf32>
    %38 = tpu.matmul %36, %15, %cst_26 {dimension_numbers = #tpu.dot_dimension_numbers<[1], [0], [0], [1], [0, 0, 1, 1], [], []>} : vector<8x128xf32>, vector<128x128xf32>, vector<8x128xf32> -> vector<8x128xf32>
    %39 = arith.addf %37, %38 : vector<8x128xf32>
    %40 = math.tanh %39 : vector<8x128xf32>
    %c48 = arith.constant 48 : index
    %c0_27 = arith.constant 0 : index
    %41 = vector.load %arg9[%c48, %c0_27] : memref<64x128xf32, #tpu.memory_space<vmem>>, vector<8x128xf32>
    %cst_28 = arith.constant dense<0.000000e+00> : vector<8x128xf32>
    %42 = tpu.matmul %40, %15, %cst_28 {dimension_numbers = #tpu.dot_dimension_numbers<[1], [0], [0], [1], [0, 0, 1, 1], [], []>} : vector<8x128xf32>, vector<128x128xf32>, vector<8x128xf32> -> vector<8x128xf32>
    %43 = arith.addf %41, %42 : vector<8x128xf32>
    %44 = math.tanh %43 : vector<8x128xf32>
    %c56 = arith.constant 56 : index
    %c0_29 = arith.constant 0 : index
    %45 = vector.load %arg9[%c56, %c0_29] : memref<64x128xf32, #tpu.memory_space<vmem>>, vector<8x128xf32>
    %cst_30 = arith.constant dense<0.000000e+00> : vector<8x128xf32>
    %46 = tpu.matmul %44, %15, %cst_30 {dimension_numbers = #tpu.dot_dimension_numbers<[1], [0], [0], [1], [0, 0, 1, 1], [], []>} : vector<8x128xf32>, vector<128x128xf32>, vector<8x128xf32> -> vector<8x128xf32>
    %47 = arith.addf %45, %46 : vector<8x128xf32>
    %48 = math.tanh %47 : vector<8x128xf32>
    %c0_31 = arith.constant 0 : index
    %c0_32 = arith.constant 0 : index
    %49 = vector.load %arg6[%c0_31, %c0_32] : memref<128x128xf32, #tpu.memory_space<vmem>>, vector<128x128xf32>
    %cst_33 = arith.constant dense<0.000000e+00> : vector<8x128xf32>
    %50 = tpu.matmul %48, %49, %cst_33 {dimension_numbers = #tpu.dot_dimension_numbers<[1], [0], [0], [1], [0, 0, 1, 1], [], []>} : vector<8x128xf32>, vector<128x128xf32>, vector<8x128xf32> -> vector<8x128xf32>
    %c0_34 = arith.constant 0 : index
    %c0_35 = arith.constant 0 : index
    %51 = vector.load %arg7[%c0_34, %c0_35] : memref<1x128xf32, #tpu.memory_space<vmem>>, vector<1x128xf32>
    %52 = vector.broadcast %51 : vector<1x128xf32> to vector<8x128xf32>
    %53 = arith.addf %50, %52 : vector<8x128xf32>
    %c0_36 = arith.constant 0 : index
    %c0_37 = arith.constant 0 : index
    %54 = vector.load %arg8[%c0_36, %c0_37] : memref<8x128xf32, #tpu.memory_space<vmem>>, vector<8x128xf32>
    tpu.vector_store %arg8[%c0_36, %c0_37], %53 {strides = array<i32>} : memref<8x128xf32, #tpu.memory_space<vmem>>, vector<8x128xf32>,
    return
  }
  func.func @transform_0(%arg0: i32) -> (i32, i32, i32) {
    %c0_i32 = arith.constant 0 : i32
    %c0_i32_0 = arith.constant 0 : i32
    %c0_i32_1 = arith.constant 0 : i32
    return %arg0, %c0_i32, %c0_i32_0 : i32, i32, i32
  }
  func.func @transform_1(%arg0: i32) -> (i32, i32) {
    %c0_i32 = arith.constant 0 : i32
    %c0_i32_0 = arith.constant 0 : i32
    %c0_i32_1 = arith.constant 0 : i32
    return %c0_i32, %c0_i32_0 : i32, i32
  }
  func.func @transform_2(%arg0: i32) -> (i32, i32) {
    %c0_i32 = arith.constant 0 : i32
    %c0_i32_0 = arith.constant 0 : i32
    %c0_i32_1 = arith.constant 0 : i32
    return %c0_i32, %c0_i32_0 : i32, i32
  }
  func.func @transform_3(%arg0: i32) -> (i32, i32) {
    %c0_i32 = arith.constant 0 : i32
    %c0_i32_0 = arith.constant 0 : i32
    %c0_i32_1 = arith.constant 0 : i32
    return %c0_i32, %c0_i32_0 : i32, i32
  }
  func.func @transform_4(%arg0: i32) -> (i32, i32) {
    %c0_i32 = arith.constant 0 : i32
    %c0_i32_0 = arith.constant 0 : i32
    %c0_i32_1 = arith.constant 0 : i32
    return %c0_i32, %c0_i32_0 : i32, i32
  }
  func.func @transform_5(%arg0: i32) -> (i32, i32) {
    %c0_i32 = arith.constant 0 : i32
    %c0_i32_0 = arith.constant 0 : i32
    %c0_i32_1 = arith.constant 0 : i32
    return %c0_i32, %c0_i32_0 : i32, i32
  }
  func.func @transform_6(%arg0: i32) -> (i32, i32) {
    %c0_i32 = arith.constant 0 : i32
    %c0_i32_0 = arith.constant 0 : i32
    %c0_i32_1 = arith.constant 0 : i32
    return %c0_i32, %c0_i32_0 : i32, i32
  }
  func.func @transform_7(%arg0: i32) -> (i32, i32) {
    %c0_i32 = arith.constant 0 : i32
    %c0_i32_0 = arith.constant 0 : i32
    return %arg0, %c0_i32 : i32, i32
  }
}

module attributes {stable_mosaic.version = 11 : i64} {
  func.func @rnn_model_kernel(%arg0: i32, %arg1: memref<1x64x1xi32, #tpu.memory_space<vmem>>, %arg2: memref<128x128xf32, #tpu.memory_space<vmem>>, %arg3: memref<128x128xf32, #tpu.memory_space<vmem>>, %arg4: memref<128x128xf32, #tpu.memory_space<vmem>>, %arg5: memref<1x128xf32, #tpu.memory_space<vmem>>, %arg6: memref<128x128xf32, #tpu.memory_space<vmem>>, %arg7: memref<1x128xf32, #tpu.memory_space<vmem>>, %arg8: memref<8x128xf32, #tpu.memory_space<vmem>>, %arg9: memref<64x128xf32, #tpu.memory_space<vmem>>) attributes {dimension_semantics = [#tpu.dimension_semantics<parallel>], iteration_bounds = array<i64: 1>, scalar_prefetch = 0 : i64, scratch_operands = 1 : i64, tpu.core_type = #tpu.core_type<tc>, window_params = [{transform_indices = @transform_0, window_bounds = array<i64: 1, 64, 1>}, {pipeline_mode = #tpu.pipeline_mode<synchronous>, transform_indices = @transform_1, window_bounds = array<i64: 128, 128>}, {pipeline_mode = #tpu.pipeline_mode<synchronous>, transform_indices = @transform_2, window_bounds = array<i64: 128, 128>}, {pipeline_mode = #tpu.pipeline_mode<synchronous>, transform_indices = @transform_3, window_bounds = array<i64: 128, 128>}, {pipeline_mode = #tpu.pipeline_mode<synchronous>, transform_indices = @transform_4, window_bounds = array<i64: 1, 128>}, {pipeline_mode = #tpu.pipeline_mode<synchronous>, transform_indices = @transform_5, window_bounds = array<i64: 128, 128>}, {pipeline_mode = #tpu.pipeline_mode<synchronous>, transform_indices = @transform_6, window_bounds = array<i64: 1, 128>}, {transform_indices = @transform_7, window_bounds = array<i64: 8, 128>}]} {
    %c0 = arith.constant 0 : index
    %c0_0 = arith.constant 0 : index
    %c0_1 = arith.constant 0 : index
    %0 = vector.load %arg1[%c0, %c0_0, %c0_1] : memref<1x64x1xi32, #tpu.memory_space<vmem>>, vector<1x64x1xi32>
    %1 = vector.shape_cast %0 : vector<1x64x1xi32> to vector<64x1xi32>
    %2 = tpu.iota {dimensions = array<i32: 1>} : vector<64x128xi32>
    %3 = vector.broadcast %1 : vector<64x1xi32> to vector<64x128xi32>
    %4 = arith.cmpi eq, %2, %3 : vector<64x128xi32>
    %5 = arith.extui %4 : vector<64x128xi1> to vector<64x128xi32>
    %6 = arith.sitofp %5 : vector<64x128xi32> to vector<64x128xf32>
    %c0_2 = arith.constant 0 : index
    %c0_3 = arith.constant 0 : index
    %7 = vector.load %arg2[%c0_2, %c0_3] : memref<128x128xf32, #tpu.memory_space<vmem>>, vector<128x128xf32>
    %cst = arith.constant dense<0.000000e+00> : vector<64x128xf32>
    %8 = tpu.matmul %6, %7, %cst {dimension_numbers = #tpu.dot_dimension_numbers<[1], [0], [0], [1], [0, 0, 1, 1], [], []>} : vector<64x128xf32>, vector<128x128xf32>, vector<64x128xf32> -> vector<64x128xf32>
    %c0_4 = arith.constant 0 : index
    %c0_5 = arith.constant 0 : index
    %9 = vector.load %arg3[%c0_4, %c0_5] : memref<128x128xf32, #tpu.memory_space<vmem>>, vector<128x128xf32>
    %cst_6 = arith.constant dense<0.000000e+00> : vector<64x128xf32>
    %10 = tpu.matmul %8, %9, %cst_6 {dimension_numbers = #tpu.dot_dimension_numbers<[1], [0], [0], [1], [0, 0, 1, 1], [], []>} : vector<64x128xf32>, vector<128x128xf32>, vector<64x128xf32> -> vector<64x128xf32>
    %c0_7 = arith.constant 0 : index
    %c0_8 = arith.constant 0 : index
    %11 = vector.load %arg5[%c0_7, %c0_8] : memref<1x128xf32, #tpu.memory_space<vmem>>, vector<1x128xf32>
    %12 = vector.broadcast %11 : vector<1x128xf32> to vector<64x128xf32>
    %13 = arith.addf %10, %12 : vector<64x128xf32>
    %c0_9 = arith.constant 0 : index
    %c0_10 = arith.constant 0 : index
    %14 = vector.load %arg9[%c0_9, %c0_10] : memref<64x128xf32, #tpu.memory_space<vmem>>, vector<64x128xf32>
    tpu.vector_store %arg9[%c0_9, %c0_10], %13 {strides = array<i32>} : memref<64x128xf32, #tpu.memory_space<vmem>>, vector<64x128xf32>,
    %c0_11 = arith.constant 0 : index
    %c0_12 = arith.constant 0 : index
    %15 = vector.load %arg4[%c0_11, %c0_12] : memref<128x128xf32, #tpu.memory_space<vmem>>, vector<128x128xf32>
    %cst_13 = arith.constant 0.000000e+00 : f32
    %16 = vector.broadcast %cst_13 : f32 to vector<8x128xf32>
    %c0_14 = arith.constant 0 : index
    %c0_15 = arith.constant 0 : index
    %17 = vector.load %arg9[%c0_14, %c0_15] : memref<64x128xf32, #tpu.memory_space<vmem>>, vector<8x128xf32>
    %cst_16 = arith.constant dense<0.000000e+00> : vector<8x128xf32>
    %18 = tpu.matmul %16, %15, %cst_16 {dimension_numbers = #tpu.dot_dimension_numbers<[1], [0], [0], [1], [0, 0, 1, 1], [], []>} : vector<8x128xf32>, vector<128x128xf32>, vector<8x128xf32> -> vector<8x128xf32>
    %19 = arith.addf %17, %18 : vector<8x128xf32>
    %20 = math.tanh %19 : vector<8x128xf32>
    %c8 = arith.constant 8 : index
    %c0_17 = arith.constant 0 : index
    %21 = vector.load %arg9[%c8, %c0_17] : memref<64x128xf32, #tpu.memory_space<vmem>>, vector<8x128xf32>
    %cst_18 = arith.constant dense<0.000000e+00> : vector<8x128xf32>
    %22 = tpu.matmul %20, %15, %cst_18 {dimension_numbers = #tpu.dot_dimension_numbers<[1], [0], [0], [1], [0, 0, 1, 1], [], []>} : vector<8x128xf32>, vector<128x128xf32>, vector<8x128xf32> -> vector<8x128xf32>
    %23 = arith.addf %21, %22 : vector<8x128xf32>
    %24 = math.tanh %23 : vector<8x128xf32>
    %c16 = arith.constant 16 : index
    %c0_19 = arith.constant 0 : index
    %25 = vector.load %arg9[%c16, %c0_19] : memref<64x128xf32, #tpu.memory_space<vmem>>, vector<8x128xf32>
    %cst_20 = arith.constant dense<0.000000e+00> : vector<8x128xf32>
    %26 = tpu.matmul %24, %15, %cst_20 {dimension_numbers = #tpu.dot_dimension_numbers<[1], [0], [0], [1], [0, 0, 1, 1], [], []>} : vector<8x128xf32>, vector<128x128xf32>, vector<8x128xf32> -> vector<8x128xf32>
    %27 = arith.addf %25, %26 : vector<8x128xf32>
    %28 = math.tanh %27 : vector<8x128xf32>
    %c24 = arith.constant 24 : index
    %c0_21 = arith.constant 0 : index
    %29 = vector.load %arg9[%c24, %c0_21] : memref<64x128xf32, #tpu.memory_space<vmem>>, vector<8x128xf32>
    %cst_22 = arith.constant dense<0.000000e+00> : vector<8x128xf32>
    %30 = tpu.matmul %28, %15, %cst_22 {dimension_numbers = #tpu.dot_dimension_numbers<[1], [0], [0], [1], [0, 0, 1, 1], [], []>} : vector<8x128xf32>, vector<128x128xf32>, vector<8x128xf32> -> vector<8x128xf32>
    %31 = arith.addf %29, %30 : vector<8x128xf32>
    %32 = math.tanh %31 : vector<8x128xf32>
    %c32 = arith.constant 32 : index
    %c0_23 = arith.constant 0 : index
    %33 = vector.load %arg9[%c32, %c0_23] : memref<64x128xf32, #tpu.memory_space<vmem>>, vector<8x128xf32>
    %cst_24 = arith.constant dense<0.000000e+00> : vector<8x128xf32>
    %34 = tpu.matmul %32, %15, %cst_24 {dimension_numbers = #tpu.dot_dimension_numbers<[1], [0], [0], [1], [0, 0, 1, 1], [], []>} : vector<8x128xf32>, vector<128x128xf32>, vector<8x128xf32> -> vector<8x128xf32>
    %35 = arith.addf %33, %34 : vector<8x128xf32>
    %36 = math.tanh %35 : vector<8x128xf32>
    %c40 = arith.constant 40 : index
    %c0_25 = arith.constant 0 : index
    %37 = vector.load %arg9[%c40, %c0_25] : memref<64x128xf32, #tpu.memory_space<vmem>>, vector<8x128xf32>
    %cst_26 = arith.constant dense<0.000000e+00> : vector<8x128xf32>
    %38 = tpu.matmul %36, %15, %cst_26 {dimension_numbers = #tpu.dot_dimension_numbers<[1], [0], [0], [1], [0, 0, 1, 1], [], []>} : vector<8x128xf32>, vector<128x128xf32>, vector<8x128xf32> -> vector<8x128xf32>
    %39 = arith.addf %37, %38 : vector<8x128xf32>
    %40 = math.tanh %39 : vector<8x128xf32>
    %c48 = arith.constant 48 : index
    %c0_27 = arith.constant 0 : index
    %41 = vector.load %arg9[%c48, %c0_27] : memref<64x128xf32, #tpu.memory_space<vmem>>, vector<8x128xf32>
    %cst_28 = arith.constant dense<0.000000e+00> : vector<8x128xf32>
    %42 = tpu.matmul %40, %15, %cst_28 {dimension_numbers = #tpu.dot_dimension_numbers<[1], [0], [0], [1], [0, 0, 1, 1], [], []>} : vector<8x128xf32>, vector<128x128xf32>, vector<8x128xf32> -> vector<8x128xf32>
    %43 = arith.addf %41, %42 : vector<8x128xf32>
    %44 = math.tanh %43 : vector<8x128xf32>
    %c56 = arith.constant 56 : index
    %c0_29 = arith.constant 0 : index
    %45 = vector.load %arg9[%c56, %c0_29] : memref<64x128xf32, #tpu.memory_space<vmem>>, vector<8x128xf32>
    %cst_30 = arith.constant dense<0.000000e+00> : vector<8x128xf32>
    %46 = tpu.matmul %44, %15, %cst_30 {dimension_numbers = #tpu.dot_dimension_numbers<[1], [0], [0], [1], [0, 0, 1, 1], [], []>} : vector<8x128xf32>, vector<128x128xf32>, vector<8x128xf32> -> vector<8x128xf32>
    %47 = arith.addf %45, %46 : vector<8x128xf32>
    %48 = math.tanh %47 : vector<8x128xf32>
    %c0_31 = arith.constant 0 : index
    %c0_32 = arith.constant 0 : index
    %49 = vector.load %arg6[%c0_31, %c0_32] : memref<128x128xf32, #tpu.memory_space<vmem>>, vector<128x128xf32>
    %cst_33 = arith.constant dense<0.000000e+00> : vector<8x128xf32>
    %50 = tpu.matmul %48, %49, %cst_33 {dimension_numbers = #tpu.dot_dimension_numbers<[1], [0], [0], [1], [0, 0, 1, 1], [], []>} : vector<8x128xf32>, vector<128x128xf32>, vector<8x128xf32> -> vector<8x128xf32>
    %c0_34 = arith.constant 0 : index
    %c0_35 = arith.constant 0 : index
    %51 = vector.load %arg7[%c0_34, %c0_35] : memref<1x128xf32, #tpu.memory_space<vmem>>, vector<1x128xf32>
    %52 = vector.broadcast %51 : vector<1x128xf32> to vector<8x128xf32>
    %53 = arith.addf %50, %52 : vector<8x128xf32>
    %c0_36 = arith.constant 0 : index
    %c0_37 = arith.constant 0 : index
    %54 = vector.load %arg8[%c0_36, %c0_37] : memref<8x128xf32, #tpu.memory_space<vmem>>, vector<8x128xf32>
    tpu.vector_store %arg8[%c0_36, %c0_37], %53 {strides = array<i32>} : memref<8x128xf32, #tpu.memory_space<vmem>>, vector<8x128xf32>,
    return
  }
  func.func @transform_0(%arg0: i32) -> (i32, i32, i32) {
    %c0_i32 = arith.constant 0 : i32
    %c0_i32_0 = arith.constant 0 : i32
    %c0_i32_1 = arith.constant 0 : i32
    return %arg0, %c0_i32, %c0_i32_0 : i32, i32, i32
  }
  func.func @transform_1(%arg0: i32) -> (i32, i32) {
    %c0_i32 = arith.constant 0 : i32
    %c0_i32_0 = arith.constant 0 : i32
    %c0_i32_1 = arith.constant 0 : i32
    return %c0_i32, %c0_i32_0 : i32, i32
  }
  func.func @transform_2(%arg0: i32) -> (i32, i32) {
    %c0_i32 = arith.constant 0 : i32
    %c0_i32_0 = arith.constant 0 : i32
    %c0_i32_1 = arith.constant 0 : i32
    return %c0_i32, %c0_i32_0 : i32, i32
  }
  func.func @transform_3(%arg0: i32) -> (i32, i32) {
    %c0_i32 = arith.constant 0 : i32
    %c0_i32_0 = arith.constant 0 : i32
    %c0_i32_1 = arith.constant 0 : i32
    return %c0_i32, %c0_i32_0 : i32, i32
  }
  func.func @transform_4(%arg0: i32) -> (i32, i32) {
    %c0_i32 = arith.constant 0 : i32
    %c0_i32_0 = arith.constant 0 : i32
    %c0_i32_1 = arith.constant 0 : i32
    return %c0_i32, %c0_i32_0 : i32, i32
  }
  func.func @transform_5(%arg0: i32) -> (i32, i32) {
    %c0_i32 = arith.constant 0 : i32
    %c0_i32_0 = arith.constant 0 : i32
    %c0_i32_1 = arith.constant 0 : i32
    return %c0_i32, %c0_i32_0 : i32, i32
  }
  func.func @transform_6(%arg0: i32) -> (i32, i32) {
    %c0_i32 = arith.constant 0 : i32
    %c0_i32_0 = arith.constant 0 : i32
    %c0_i32_1 = arith.constant 0 : i32
    return %c0_i32, %c0_i32_0 : i32, i32
  }
  func.func @transform_7(%arg0: i32) -> (i32, i32) {
    %c0_i32 = arith.constant 0 : i32
    %c0_i32_0 = arith.constant 0 : i32
    return %arg0, %c0_i32 : i32, i32
  }
}

</mosaic_0001>

<bundles_post_ra>
// kernel: tpu_custom_call.1
= control target key start
LH: loop header
LB: loop body
LE: loop exit
PB: predicated region body
PF: predicated region fallthrough
CT: control target
= control target key end

     0   :  { %12 = vsyncpa [#allocation4], 0  ;;  %s2512_s0 = inlined_call_operand.vmem [shape: s32[1,64,1], index: 0, kind: input, shape index: {}]   ;;  %s2513_s1 = inlined_call_operand.hbm [shape: f32[128,128], index: 1, kind: input, shape index: {}]   ;;  %s2514_s2 = inlined_call_operand.hbm [shape: f32[128,128], index: 2, kind: input, shape index: {}]   ;;  %s2515_s3 = inlined_call_operand.hbm [shape: f32[128,128], index: 3, kind: input, shape index: {}]   ;;  %s2516_s4 = inlined_call_operand.vmem [shape: f32[1,128], index: 4, kind: input, shape index: {}]   ;;  %s2517_s5 = inlined_call_operand.hbm [shape: f32[128,128], index: 5, kind: input, shape index: {}]   ;;  %s2518_s6 = inlined_call_operand.vmem [shape: f32[1,128], index: 6, kind: input, shape index: {}]   ;;  %s2519_s7 = inlined_call_operand.hbm [shape: f32[8,128], index: 7, kind: output, shape index: {}]  }
   0x1   :  { %13 = vsyncpa [#allocation7], 0 }
   0x2   :  { %14 = vsyncpa [#allocation10], 0 }
   0x3   :  { %15 = vsyncpa [#allocation5], 0  ;;  %s2158_s24 = smov [#allocation6]   ;;  %s2159_s26 = smov [#allocation3]  }
   0x4   :  { %s35_s25 = sshll.u32 %s2158_s24, 4  ;;  %s23_s27 = sshll.u32 %s2159_s26, 4  ;;  %s36_s25 = int_to_ptr.vmem [resolvable:$true] %s35_s25  ;;  %s2210_s27 = int_to_ptr.vmem [resolvable:$true] %s23_s27 }
   0x5   :  { %s2040_s30 = scalar_lea.hbm %s2514_s2, 2048 }
   0x6   :  { %p2041_p0 = scmp.ne.s32.totalorder %s2514_s2, %s2040_s30  ;;  %p2044_p1 = scmp.lt.u32.totalorder %s2040_s30, %s2514_s2 }
   0x8   :  { %p2046_p2 = pnand %p2044_p1, %p2041_p0 }
   0xa   :  { %2049 = shalt.err (!%p2046_p2)
}
   0xb   :  { %s2050_s12 = scalar_lea.vmem %s36_s25, 2048  ;;  %p2055_p4 = scmp.lt.s32.totalorder %s36_s25, %s36_s25 }
   0xc   :  { %p2051_p3 = scmp.ne.s32.totalorder %s36_s25, %s2050_s12  ;;  %p2056_p5 = scmp.lt.s32.totalorder %s2050_s12, %s2050_s12 }
   0xe   :  { %p2057_p6 = por %p2056_p5, %p2055_p4 }
  0x10   :  { %p2058_p7 = pnand %p2057_p6, %p2051_p3 }
  0x12   :  { %2061 = shalt.err (!%p2058_p7)
}
  0x13   :  { %s2160_s13 = smov 128   ;;  %s2161_s14 = smov 8  }
  0x14   :  { %41 = dma.hbm_to_vmem [thread:$0]  %s2514_s2, 2048, %s36_s25, [#allocation7], %s2160_s13, %s2160_s13, %s2161_s14  }
  0x15   :  { %s2062_s19 = scalar_lea.hbm %s2513_s1, 2048 }
  0x16   :  { %p2063_p8 = scmp.ne.s32.totalorder %s2513_s1, %s2062_s19  ;;  %p2066_p9 = scmp.lt.u32.totalorder %s2062_s19, %s2513_s1 }
  0x18   :  { %p2068_p10 = pnand %p2066_p9, %p2063_p8 }
  0x1a   :  { %2071 = shalt.err (!%p2068_p10)
}
  0x1b   :  { %s2072_s24 = scalar_lea.vmem %s2210_s27, 2048  ;;  %p2077_p12 = scmp.lt.s32.totalorder %s2210_s27, %s2210_s27 }
  0x1c   :  { %p2073_p11 = scmp.ne.s32.totalorder %s2210_s27, %s2072_s24  ;;  %p2078_p13 = scmp.lt.s32.totalorder %s2072_s24, %s2072_s24 }
  0x1e   :  { %p2079_p0 = por %p2078_p13, %p2077_p12 }
  0x20   :  { %p2080_p1 = pnand %p2079_p0, %p2073_p11 }
  0x22   :  { %2083 = shalt.err (!%p2080_p1)
}
  0x23   :  { %29 = dma.hbm_to_vmem [thread:$0]  %s2513_s1, 2048, %s2210_s27, [#allocation4], %s2160_s13, %s2160_s13, %s2161_s14  }
  0x24   :  { %s2162_s26 = smov [#allocation8]   ;;  %s2163_s29 = smov [#allocation9]  }
  0x25   :  { %s47_s28 = sshll.u32 %s2162_s26, 4  ;;  %s61_s30 = sshll.u32 %s2163_s29, 4  ;;  %s48_s28 = int_to_ptr.vmem [resolvable:$true] %s47_s28  ;;  %s2247_s30 = int_to_ptr.vmem [resolvable:$true] %s61_s30 }
  0x26   :  { %s2084_s10 = scalar_lea.hbm %s2515_s3, 2048 }
  0x27   :  { %p2085_p2 = scmp.ne.s32.totalorder %s2515_s3, %s2084_s10  ;;  %p2088_p3 = scmp.lt.u32.totalorder %s2084_s10, %s2515_s3 }
  0x29   :  { %p2090_p4 = pnand %p2088_p3, %p2085_p2 }
  0x2b   :  { %2093 = shalt.err (!%p2090_p4)
}
  0x2c   :  { %s2094_s1 = scalar_lea.vmem %s48_s28, 2048  ;;  %p2099_p6 = scmp.lt.s32.totalorder %s48_s28, %s48_s28 }
  0x2d   :  { %p2095_p5 = scmp.ne.s32.totalorder %s48_s28, %s2094_s1  ;;  %p2100_p7 = scmp.lt.s32.totalorder %s2094_s1, %s2094_s1 }
  0x2f   :  { %p2101_p8 = por %p2100_p7, %p2099_p6 }
  0x31   :  { %p2102_p9 = pnand %p2101_p8, %p2095_p5 }
  0x33   :  { %2105 = shalt.err (!%p2102_p9)
}
  0x34   :  { %53 = dma.hbm_to_vmem [thread:$0]  %s2515_s3, 2048, %s48_s28, [#allocation7], %s2160_s13, %s2160_s13, %s2161_s14  }
  0x35   :  { %s2106_s20 = scalar_lea.hbm %s2517_s5, 2048 }
  0x36   :  { %p2107_p10 = scmp.ne.s32.totalorder %s2517_s5, %s2106_s20  ;;  %p2110_p11 = scmp.lt.u32.totalorder %s2106_s20, %s2517_s5 }
  0x38   :  { %p2112_p12 = pnand %p2110_p11, %p2107_p10 }
  0x3a   :  { %2115 = shalt.err (!%p2112_p12)
}
  0x3b   :  { %s2116_s2 = scalar_lea.vmem %s2247_s30, 2048  ;;  %p2121_p0 = scmp.lt.s32.totalorder %s2247_s30, %s2247_s30 }
  0x3c   :  { %p2117_p13 = scmp.ne.s32.totalorder %s2247_s30, %s2116_s2  ;;  %p2122_p1 = scmp.lt.s32.totalorder %s2116_s2, %s2116_s2 }
  0x3e   :  { %p2123_p2 = por %p2122_p1, %p2121_p0 }
  0x40   :  { %p2124_p3 = pnand %p2123_p2, %p2117_p13 }
  0x42   :  { %2127 = shalt.err (!%p2124_p3)
}
  0x43   :  { %67 = dma.hbm_to_vmem [thread:$0]  %s2517_s5, 2048, %s2247_s30, [#allocation10], %s2160_s13, %s2160_s13, %s2161_s14  }
  0x44   :  { %2150 = dma.done.wait [#allocation4], 2048  }
  0x45   :  { %2151 = vsyncadd [#allocation4], 4294965248 }
  0x46   :  { %2152 = dma.done.wait [#allocation7], 4096  }
  0x47   :  { %2153 = vsyncadd [#allocation7], 4294963200 }
  0x48   :  { %2154 = dma.done.wait [#allocation10], 2048  }
  0x49   :  { %2155 = vsyncadd [#allocation10], 4294965248  ;;  %v2164_v0 = vmov 0   ;;  %v82_v1 = vld [vmem:[%s2512_s0] sm:$0xff]  ;;  %v84_v2 = vld [vmem:[%s2512_s0 + $0x10] sm:$0xff]  ;;  %v2165_v53 = vmov 0.0|0.0   ;;  %v90_v58 = vlaneseq }
  0x4a   :  { %2022 = vset.pattern.permute.xlu0 %v2164_v0  ;;  %2023 = vset.pattern.permute.xlu1 %v2164_v0  ;;  %v83_v3 = vld [vmem:[%s2512_s0 + $0x8] sm:$0xff]  ;;  %v85_v4 = vld [vmem:[%s2512_s0 + $0x18] sm:$0xff]  ;;  %v140_v5 = vld [vmem:[#allocation3] sm:$0xff]  ;;  %v2166_v0 = vmov 1.0   ;;  %vm2167_vm8 = vmmov 0   ;;  %s2169_s19 = smov [#allocation11]  }
  0x4b   :  { %93 = vperm.xlu0 %2022, %v82_v1   ;;  %99 = vperm.xlu1 %2023, %v84_v2   ;;  %v141_v6 = vld [vmem:[#allocation3 + $0x8] sm:$0xff]  ;;  %v142_v8 = vld [vmem:[#allocation3 + $0x10] sm:$0xff]  ;;  %v143_v9 = vld [vmem:[#allocation3 + $0x18] sm:$0xff]  ;;  %v91_v59 = vand.u32 127, %v90_v58  ;;  %s1097_s20 = sshll.u32 %s2169_s19, 4  ;;  %s1098_s20 = int_to_ptr.vmem [resolvable:$true] %s1097_s20 }
  0x4c   :  { %v1730_v7 = vpack.c.bf16 %v141_v6, %v140_v5  ;;  %v1734_v10 = vpack.c.bf16 %v143_v9, %v142_v8  ;;  %v144_v11 = vld [vmem:[#allocation3 + $0x20] sm:$0xff]  ;;  %v145_v12 = vld [vmem:[#allocation3 + $0x28] sm:$0xff]  ;;  %v146_v16 = vld [vmem:[#allocation3 + $0x30] sm:$0xff]  ;;  %s2128_s21 = scalar_lea.vmem %s1098_s20, 128  ;;  %p2133_p5 = scmp.lt.s32.totalorder %s1098_s20, %s1098_s20 }
  0x4d   :  { %v86_v13 = vld [vmem:[%s2512_s0 + $0x20] sm:$0xff]  ;;  %v87_v14 = vld [vmem:[%s2512_s0 + $0x28] sm:$0xff]  ;;  %v1738_v15 = vpack.c.bf16 %v145_v12, %v144_v11  ;;  %v147_v17 = vld [vmem:[#allocation3 + $0x38] sm:$0xff]  ;;  %p2129_p4 = scmp.ne.s32.totalorder %s1098_s20, %s2128_s21  ;;  %p2134_p6 = scmp.lt.s32.totalorder %s2128_s21, %s2128_s21 }
  0x4e   :  { %1731 = vmatprep.subr.bf16.mxu0 %v1730_v7  ;;  %v88_v18 = vld [vmem:[%s2512_s0 + $0x30] sm:$0xff]  ;;  %v1742_v19 = vpack.c.bf16 %v147_v17, %v146_v16  ;;  %v148_v20 = vld [vmem:[#allocation3 + $0x40] sm:$0xff]  ;;  %v149_v21 = vld [vmem:[#allocation3 + $0x48] sm:$0xff] }
  0x4f   :  { %96 = vperm.xlu0 %2022, %v83_v3   ;;  %102 = vperm.xlu1 %2023, %v85_v4   ;;  %v89_v22 = vld [vmem:[%s2512_s0 + $0x38] sm:$0xff]  ;;  %v261_v23 = vld [vmem:[#allocation6] sm:$0xff]  ;;  %v262_v24 = vld [vmem:[#allocation6 + $0x8] sm:$0xff]  ;;  %v1746_v25 = vpack.c.bf16 %v149_v21, %v148_v20  ;;  %p2135_p7 = por %p2134_p6, %p2133_p5 }
  0x50   :  { %1733 = vmatpush3.bf16.msra.mxu0 %v1730_v7  ;;  %v1762_v26 = vpack.c.bf16 %v262_v24, %v261_v23  ;;  %v263_v27 = vld [vmem:[#allocation6 + $0x10] sm:$0xff]  ;;  %v151_v29 = vld [vmem:[#allocation3 + $0x58] sm:$0xff]  ;;  %v265_v32 = vld [vmem:[#allocation6 + $0x20] sm:$0xff] }
  0x51   :  { %1735 = vmatprep.subr.bf16.mxu0 %v1734_v10  ;;  %v150_v28 = vld [vmem:[#allocation3 + $0x50] sm:$0xff]  ;;  %v264_v30 = vld [vmem:[#allocation6 + $0x18] sm:$0xff]  ;;  %v266_v33 = vld [vmem:[#allocation6 + $0x28] sm:$0xff]  ;;  %p2136_p8 = pnand %p2135_p7, %p2129_p4 }
  0x52   :  { %1763 = vmatprep.subr.bf16.mxu1 %v1762_v26  ;;  %v1766_v31 = vpack.c.bf16 %v264_v30, %v263_v27  ;;  %v1750_v34 = vpack.c.bf16 %v151_v29, %v150_v28  ;;  %v152_v35 = vld [vmem:[#allocation3 + $0x60] sm:$0xff]  ;;  %v1770_v36 = vpack.c.bf16 %v266_v33, %v265_v32  ;;  %v153_v37 = vld [vmem:[#allocation3 + $0x68] sm:$0xff]  ;;  %v267_v38 = vld [vmem:[#allocation6 + $0x30] sm:$0xff]  ;;  %v2168_v29 = vmov 0.0  }
  0x53   :  { %105 = vperm.xlu0 %2022, %v86_v13   ;;  %108 = vperm.xlu1 %2023, %v87_v14   ;;  %v268_v39 = vld [vmem:[#allocation6 + $0x38] sm:$0xff]  ;;  %v1754_v40 = vpack.c.bf16 %v153_v37, %v152_v35  ;;  %v154_v41 = vld [vmem:[#allocation3 + $0x70] sm:$0xff]  ;;  %v269_v44 = vld [vmem:[#allocation6 + $0x40] sm:$0xff] }
  0x54   :  { %1737 = vmatpush3.bf16.msra.mxu0 %v1734_v10  ;;  %1765 = vmatpush3.bf16.msra.mxu1 %v1762_v26  ;;  %v1774_v42 = vpack.c.bf16 %v268_v39, %v267_v38  ;;  %v155_v43 = vld [vmem:[#allocation3 + $0x78] sm:$0xff]  ;;  %v270_v45 = vld [vmem:[#allocation6 + $0x48] sm:$0xff]  ;;  %v271_v48 = vld [vmem:[#allocation6 + $0x50] sm:$0xff] }
  0x55   :  { %1739 = vmatprep.subr.bf16.mxu0 %v1738_v15  ;;  %1767 = vmatprep.subr.bf16.mxu1 %v1766_v31  ;;  %v1758_v46 = vpack.c.bf16 %v155_v43, %v154_v41  ;;  %v1778_v47 = vpack.c.bf16 %v270_v45, %v269_v44  ;;  %v272_v49 = vld [vmem:[#allocation6 + $0x58] sm:$0xff]  ;;  %v273_v51 = vld [vmem:[#allocation6 + $0x60] sm:$0xff]  ;;  %v274_v52 = vld [vmem:[#allocation6 + $0x68] sm:$0xff] }
  0x56   :  { %v1782_v50 = vpack.c.bf16 %v272_v49, %v271_v48  ;;  %v1786_v54 = vpack.c.bf16 %v274_v52, %v273_v51  ;;  %v275_v55 = vld [vmem:[#allocation6 + $0x70] sm:$0xff]  ;;  %v276_v56 = vld [vmem:[#allocation6 + $0x78] sm:$0xff]  ;;  %v397_v62 = vld [vmem:[#allocation8] sm:$0xff] }
  0x57   :  { %111 = vperm.xlu0 %2022, %v88_v18   ;;  %114 = vperm.xlu1 %2023, %v89_v22   ;;  %v1790_v57 = vpack.c.bf16 %v276_v56, %v275_v55  ;;  %v398_v63 = vld [vmem:[#allocation8 + $0x8] sm:$0xff]  ;;  %v399_v4 = vld [vmem:[#allocation8 + $0x10] sm:$0xff]  ;;  %v400_v5 = vld [vmem:[#allocation8 + $0x18] sm:$0xff] }
  0x58   :  { %1741 = vmatpush3.bf16.msra.mxu0 %v1738_v15  ;;  %1769 = vmatpush3.bf16.msra.mxu1 %v1766_v31  ;;  %v2310_v1 = vpack.c.bf16 %v398_v63, %v397_v62  ;;  %v2313_v6 = vpack.c.bf16 %v400_v5, %v399_v4  ;;  %v401_v9 = vld [vmem:[#allocation8 + $0x20] sm:$0xff]  ;;  %v402_v10 = vld [vmem:[#allocation8 + $0x28] sm:$0xff]  ;;  %v403_v13 = vld [vmem:[#allocation8 + $0x30] sm:$0xff] }
  0x59   :  { %1743 = vmatprep.subr.bf16.mxu0 %v1742_v19  ;;  %1771 = vmatprep.subr.bf16.mxu1 %v1770_v36  ;;  %v2317_v11 = vpack.c.bf16 %v402_v10, %v401_v9  ;;  %v404_v14 = vld [vmem:[#allocation8 + $0x38] sm:$0xff]  ;;  %v405_v17 = vld [vmem:[#allocation8 + $0x40] sm:$0xff]  ;;  %v406_v18 = vld [vmem:[#allocation8 + $0x48] sm:$0xff] }
  0x5a   :  { %v2321_v16 = vpack.c.bf16 %v404_v14, %v403_v13  ;;  %v407_v20 = vld [vmem:[#allocation8 + $0x50] sm:$0xff]  ;;  %v408_v21 = vld [vmem:[#allocation8 + $0x58] sm:$0xff]  ;;  %v409_v23 = vld [vmem:[#allocation8 + $0x60] sm:$0xff] }
  0x5b   :  { %v2329_v22 = vpack.c.bf16 %v408_v21, %v407_v20  ;;  %v410_v24 = vld [vmem:[#allocation8 + $0x68] sm:$0xff]  ;;  %v411_v26 = vld [vmem:[#allocation8 + $0x70] sm:$0xff]  ;;  %v412_v27 = vld [vmem:[#allocation8 + $0x78] sm:$0xff] }
  0x5c   :  { %1745 = vmatpush3.bf16.msra.mxu0 %v1742_v19  ;;  %1773 = vmatpush3.bf16.msra.mxu1 %v1770_v36  ;;  %v2325_v19 = vpack.c.bf16 %v406_v18, %v405_v17  ;;  %v2338_v28 = vpack.c.bf16 %v412_v27, %v411_v26  ;;  %v998_v17 = vld [vmem:[#allocation9 + $0x8] sm:$0xff]  ;;  %v999_v18 = vld [vmem:[#allocation9 + $0x10] sm:$0xff]  ;;  %v1000_v20 = vld [vmem:[#allocation9 + $0x18] sm:$0xff] }
  0x5d   :  { %1747 = vmatprep.subr.bf16.mxu0 %v1746_v25  ;;  %1775 = vmatprep.subr.bf16.mxu1 %v1774_v42  ;;  %v1990_v21 = vpack.c.bf16 %v1000_v20, %v999_v18  ;;  %v1004_v26 = vld [vmem:[#allocation9 + $0x38] sm:$0xff] }
  0x60   :  { %1749 = vmatpush3.bf16.msra.mxu0 %v1746_v25  ;;  %1777 = vmatpush3.bf16.msra.mxu1 %v1774_v42  ;;  %v2333_v25 = vpack.c.bf16 %v410_v24, %v409_v23  ;;  %v1002_v23 = vld [vmem:[#allocation9 + $0x28] sm:$0xff] }
  0x61   :  { %1751 = vmatprep.subr.bf16.mxu0 %v1750_v34  ;;  %1779 = vmatprep.subr.bf16.mxu1 %v1778_v47 }
  0x64   :  { %1753 = vmatpush3.bf16.msra.mxu0 %v1750_v34  ;;  %1781 = vmatpush3.bf16.msra.mxu1 %v1778_v47 }
  0x65   :  { %1755 = vmatprep.subr.bf16.mxu0 %v1754_v40  ;;  %1783 = vmatprep.subr.bf16.mxu1 %v1782_v50 }
  0x68   :  { %1757 = vmatpush3.bf16.msra.mxu0 %v1754_v40  ;;  %1785 = vmatpush3.bf16.msra.mxu1 %v1782_v50  ;;  %v1124_v40 = vld [vmem:[%s2516_s4] ss:$0 sm:$0xff] }
  0x69   :  { %1759 = vmatprep.subr.bf16.mxu0 %v1758_v46  ;;  %1787 = vmatprep.subr.bf16.mxu1 %v1786_v54 }
  0x6c   :  { %1761 = vmatpush3.bf16.msra.mxu0 %v1758_v46  ;;  %1789 = vmatpush3.bf16.msra.mxu1 %v1786_v54 }
  0x6d   :  { %1794 = vmatprep.subr.bf16.mxu0 %v2165_v53  ;;  %1791 = vmatprep.subr.bf16.mxu1 %v1790_v57 }
  0x70   :  { %1793 = vmatpush3.bf16.msra.mxu1 %v1790_v57 }
  0x71   :  { %1818 = vmatprep.subr.bf16.mxu1 %v2165_v53 }
  0xca   :  { %v94_v60 = vpop.permute.xlu0 %93  ;;  %v100_v61 = vpop.permute.xlu1 %99 }
  0xcb   :  { %vm116_vm0 = vcmp.eq.s32.totalorder %v91_v59, %v94_v60  ;;  %vm118_vm1 = vcmp.eq.s32.totalorder %v91_v59, %v100_v61 }
  0xcc   :  { %1359 = vmatprep.mubr.msk.f32.mxu0 %vm116_vm0, %v2166_v0 }
  0xce   :  { %v97_v2 = vpop.permute.xlu0 %96  ;;  %v103_v3 = vpop.permute.xlu1 %102 }
  0xcf   :  { %vm117_vm2 = vcmp.eq.s32.totalorder %v91_v59, %v97_v2  ;;  %vm119_vm3 = vcmp.eq.s32.totalorder %v91_v59, %v103_v3 }
  0xd0   :  { %1360 = vmatmul.mubr.msk.f32.vlgmr.msra.gmra.mrb[0].mxu0 %vm117_vm2, %v2166_v0 }
  0xd1   :  { %1362 = vmatprep.mubr.msk.f32.mxu0 %vm118_vm1, %v2166_v0  ;;  %1796 = vmatpush3.bf16.msra.mxu0 %v2310_v1 }
  0xd2   :  { %v106_v7 = vpop.permute.xlu0 %105  ;;  %v109_v8 = vpop.permute.xlu1 %108  ;;  %1797 = vmatprep.subr.bf16.mxu0 %v2165_v53 }
  0xd3   :  { %vm120_vm4 = vcmp.eq.s32.totalorder %v91_v59, %v106_v7  ;;  %vm121_vm5 = vcmp.eq.s32.totalorder %v91_v59, %v109_v8 }
  0xd4   :  { %1363 = vmatmul.mubr.msk.f32.gmra.mrb[2].mxu0 %vm119_vm3, %v2166_v0 }
  0xd5   :  { %1365 = vmatprep.mubr.msk.f32.mxu0 %vm120_vm4, %v2166_v0  ;;  %1799 = vmatpush3.bf16.msra.mxu0 %v2313_v6 }
  0xd6   :  { %v112_v12 = vpop.permute.xlu0 %111  ;;  %1800 = vmatprep.subr.bf16.mxu0 %v2165_v53  ;;  %v115_v15 = vpop.permute.xlu1 %114 }
  0xd7   :  { %vm122_vm6 = vcmp.eq.s32.totalorder %v91_v59, %v112_v12  ;;  %vm123_vm7 = vcmp.eq.s32.totalorder %v91_v59, %v115_v15 }
  0xd8   :  { %1366 = vmatmul.mubr.msk.f32.gmra.mrb[4].mxu0 %vm121_vm5, %v2166_v0 }
  0xd9   :  { %1368 = vmatprep.mubr.msk.f32.mxu0 %vm122_vm6, %v2166_v0  ;;  %1802 = vmatpush3.bf16.msra.mxu0 %v2317_v11 }
  0xda   :  { %1803 = vmatprep.subr.bf16.mxu0 %v2165_v53 }
  0xdc   :  { %1369 = vmatmul.mubr.msk.f32.gmra.mrb[6].mxu0 %vm123_vm7, %v2166_v0 }
  0xdd   :  { %1805 = vmatpush3.bf16.msra.mxu0 %v2321_v16  ;;  %1447 = vmatprep.mubr.msk.f32.mxu0 %vm2167_vm8, %v2168_v29 }
  0xde   :  { %1806 = vmatprep.subr.bf16.mxu0 %v2165_v53 }
  0xe1   :  { %1808 = vmatpush3.bf16.msra.mxu0 %v2325_v19 }
  0xe2   :  { %1809 = vmatprep.subr.bf16.mxu0 %v2165_v53 }
  0xe5   :  { %1811 = vmatpush3.bf16.msra.mxu0 %v2329_v22 }
  0xe6   :  { %1812 = vmatprep.subr.bf16.mxu0 %v2165_v53 }
  0xe9   :  { %1814 = vmatpush3.bf16.msra.mxu0 %v2333_v25 }
  0xea   :  { %1815 = vmatprep.subr.bf16.mxu0 %v2165_v53 }
  0xed   :  { %1817 = vmatpush3.bf16.msra.mxu0 %v2338_v28 }
  0xee   :  { %1842 = vmatprep.subr.bf16.mxu0 %v2165_v53 }
  0xf0   :  { %1448 = vmatmul.mubr.f32.vlgmr.msra.gmra.mrb[8].mxu0 %v2168_v29 }
  0xf1   :  { %1844 = vmatpush3.bf16.msra.mxu0 %v2310_v1  ;;  %1517 = vmatprep.mubr.msk.f32.mxu0 %vm2167_vm8, %v2168_v29 }
  0xf2   :  { %1845 = vmatprep.subr.bf16.mxu0 %v2165_v53 }
  0xf5   :  { %1847 = vmatpush3.bf16.msra.mxu0 %v2313_v6 }
  0xf6   :  { %1848 = vmatprep.subr.bf16.mxu0 %v2165_v53 }
  0xf9   :  { %1850 = vmatpush3.bf16.msra.mxu0 %v2317_v11 }
  0xfa   :  { %1851 = vmatprep.subr.bf16.mxu0 %v2165_v53 }
  0xfd   :  { %1853 = vmatpush3.bf16.msra.mxu0 %v2321_v16 }
  0xfe   :  { %1854 = vmatprep.subr.bf16.mxu0 %v2165_v53 }
 0x101   :  { %1856 = vmatpush3.bf16.msra.mxu0 %v2325_v19 }
 0x102   :  { %1857 = vmatprep.subr.bf16.mxu0 %v2165_v53 }
 0x105   :  { %1859 = vmatpush3.bf16.msra.mxu0 %v2329_v22 }
 0x106   :  { %1860 = vmatprep.subr.bf16.mxu0 %v2165_v53 }
 0x109   :  { %1862 = vmatpush3.bf16.msra.mxu0 %v2333_v25 }
 0x10a   :  { %1863 = vmatprep.subr.bf16.mxu0 %v2165_v53 }
 0x10d   :  { %1865 = vmatpush3.bf16.msra.mxu0 %v2338_v28 }
 0x10e   :  { %1890 = vmatprep.subr.bf16.mxu0 %v2165_v53 }
 0x1a3   :  { %v1361_v30 = vpop.f32.mrb[0].mxu0 }
 0x1a4   :  { %v222_v31 = vpop.f32.mrb[1].mxu0 }
 0x1a5   :  { %1403 = vmatprep.mubr.f32.mxu1 %v222_v31 }
 0x1a6   :  { %1404 = vmatmul.mubr.f32.vlgmr.msra.gmra.mrb[0].mxu1 %v1361_v30 }
 0x1a7   :  { %v1364_v32 = vpop.f32.mrb[2].mxu0  ;;  %1820 = vmatpush3.bf16.msra.mxu1 %v2310_v1 }
 0x1a8   :  { %v232_v33 = vpop.f32.mrb[3].mxu0  ;;  %1821 = vmatprep.subr.bf16.mxu1 %v2165_v53 }
 0x1a9   :  { %1406 = vmatprep.mubr.f32.mxu1 %v232_v33 }
 0x1aa   :  { %1407 = vmatmul.mubr.f32.gmra.mrb[2].mxu1 %v1364_v32 }
 0x1ab   :  { %v1367_v34 = vpop.f32.mrb[4].mxu0  ;;  %1823 = vmatpush3.bf16.msra.mxu1 %v2313_v6 }
 0x1ac   :  { %v242_v35 = vpop.f32.mrb[5].mxu0  ;;  %1824 = vmatprep.subr.bf16.mxu1 %v2165_v53 }
 0x1ad   :  { %1409 = vmatprep.mubr.f32.mxu1 %v242_v35  ;;  %v1007_v35 = vld [vmem:[#allocation9 + $0x50] sm:$0xff] }
 0x1ae   :  { %1410 = vmatmul.mubr.f32.gmra.mrb[4].mxu1 %v1367_v34 }
 0x1af   :  { %v1370_v36 = vpop.f32.mrb[6].mxu0  ;;  %1826 = vmatpush3.bf16.msra.mxu1 %v2317_v11 }
 0x1b0   :  { %v252_v37 = vpop.f32.mrb[7].mxu0  ;;  %1827 = vmatprep.subr.bf16.mxu1 %v2165_v53 }
 0x1b1   :  { %1412 = vmatprep.mubr.f32.mxu1 %v252_v37 }
 0x1b2   :  { %1413 = vmatmul.mubr.f32.gmra.mrb[6].mxu1 %v1370_v36  ;;  %v1008_v36 = vld [vmem:[#allocation9 + $0x58] sm:$0xff] }
 0x1b3   :  { %1829 = vmatpush3.bf16.msra.mxu1 %v2321_v16  ;;  %1482 = vmatprep.mubr.msk.f32.mxu1 %vm2167_vm8, %v2168_v29  ;;  %v2002_v37 = vpack.c.bf16 %v1008_v36, %v1007_v35 }
 0x1b4   :  { %1830 = vmatprep.subr.bf16.mxu1 %v2165_v53 }
 0x1b7   :  { %1832 = vmatpush3.bf16.msra.mxu1 %v2325_v19 }
 0x1b8   :  { %1833 = vmatprep.subr.bf16.mxu1 %v2165_v53 }
 0x1bb   :  { %1835 = vmatpush3.bf16.msra.mxu1 %v2329_v22 }
 0x1bc   :  { %1836 = vmatprep.subr.bf16.mxu1 %v2165_v53 }
 0x1bf   :  { %1838 = vmatpush3.bf16.msra.mxu1 %v2333_v25 }
 0x1c0   :  { %1839 = vmatprep.subr.bf16.mxu1 %v2165_v53 }
 0x1c3   :  { %1841 = vmatpush3.bf16.msra.mxu1 %v2338_v28  ;;  %v480_v38 = vpop.f32.mrb[8].mxu0 }
 0x1c4   :  { %1866 = vmatprep.subr.bf16.mxu1 %v2165_v53  ;;  %v1449_v39 = vpop.f32.mrb[9].mxu0 }
 0x1c5   :  { %v1010_v39 = vld [vmem:[#allocation9 + $0x68] sm:$0xff] }
 0x279   :  { %v1405_v41 = vpop.f32.mrb[0].mxu1 }
 0x27a   :  { %v356_v42 = vadd.f32 %v1405_v41, %v1124_v40  ;;  %v350_v43 = vpop.f32.mrb[1].mxu1  ;;  %v1011_v41 = vld [vmem:[#allocation9 + $0x70] sm:$0xff] }
 0x27b   :  { %v351_v44 = vadd.f32 %v1124_v40, %v350_v43 }
 0x27d   :  { %v484_v45 = vadd.f32 %v480_v38, %v351_v44  ;;  %v1408_v46 = vpop.f32.mrb[2].mxu1  ;;  %v1009_v38 = vld [vmem:[#allocation9 + $0x60] sm:$0xff] }
 0x27e   :  { %v2384_v47 = vadd.f32 %v1408_v46, %v1124_v40  ;;  %v360_v48 = vpop.f32.mrb[3].mxu1 }
 0x27f   :  { %2024 = vtanh.f32 %v484_v45  ;;  %v361_v49 = vadd.f32 %v1124_v40, %v360_v48  ;;  %v1125_v48 = vld [vmem:[%s2518_s6] ss:$0 sm:$0xff] }
 0x281   :  { %v1411_v50 = vpop.f32.mrb[4].mxu1 }
 0x282   :  { %v2386_v51 = vadd.f32 %v1411_v50, %v1124_v40  ;;  %v370_v52 = vpop.f32.mrb[5].mxu1 }
 0x283   :  { %v2388_v54 = vadd.f32 %v1124_v40, %v370_v52 }
 0x285   :  { %v1414_v55 = vpop.f32.mrb[6].mxu1 }
 0x286   :  { %v2390_v56 = vadd.f32 %v1414_v55, %v1124_v40  ;;  %v380_v57 = vpop.f32.mrb[7].mxu1 }
 0x287   :  { %v2392_v58 = vadd.f32 %v1124_v40, %v380_v57  ;;  %v2005_v40 = vpack.c.bf16 %v1010_v39, %v1009_v38 }
 0x289   :  { %v2025_v59 = vpop.eup %2024 }
 0x28a   :  { %1483 = vmatmul.mubr.f32.vlgmr.msra.gmra.mrb[8].mxu1 %v2025_v59 }
 0x28b   :  { %1868 = vmatpush3.bf16.msra.mxu1 %v2310_v1  ;;  %1552 = vmatprep.mubr.msk.f32.mxu1 %vm2167_vm8, %v2168_v29 }
 0x28c   :  { %1869 = vmatprep.subr.bf16.mxu1 %v2165_v53 }
 0x28f   :  { %1871 = vmatpush3.bf16.msra.mxu1 %v2313_v6 }
 0x290   :  { %1872 = vmatprep.subr.bf16.mxu1 %v2165_v53 }
 0x293   :  { %1874 = vmatpush3.bf16.msra.mxu1 %v2317_v11 }
 0x294   :  { %1875 = vmatprep.subr.bf16.mxu1 %v2165_v53 }
 0x297   :  { %1877 = vmatpush3.bf16.msra.mxu1 %v2321_v16 }
 0x298   :  { %1878 = vmatprep.subr.bf16.mxu1 %v2165_v53 }
 0x29b   :  { %1880 = vmatpush3.bf16.msra.mxu1 %v2325_v19 }
 0x29c   :  { %1881 = vmatprep.subr.bf16.mxu1 %v2165_v53 }
 0x29f   :  { %1883 = vmatpush3.bf16.msra.mxu1 %v2329_v22 }
 0x2a0   :  { %1884 = vmatprep.subr.bf16.mxu1 %v2165_v53 }
 0x2a3   :  { %1886 = vmatpush3.bf16.msra.mxu1 %v2333_v25 }
 0x2a4   :  { %1887 = vmatprep.subr.bf16.mxu1 %v2165_v53 }
 0x2a7   :  { %1889 = vmatpush3.bf16.msra.mxu1 %v2338_v28 }
 0x2a8   :  { %1914 = vmatprep.subr.bf16.mxu1 %v2165_v53 }
 0x35d   :  { %v553_v60 = vpop.f32.mrb[8].mxu1 }
 0x35e   :  { %v557_v61 = vadd.f32 %v553_v60, %v356_v42  ;;  %v1484_v62 = vpop.f32.mrb[9].mxu1  ;;  %v1012_v42 = vld [vmem:[#allocation9 + $0x78] sm:$0xff] }
 0x35f   :  { %v2008_v43 = vpack.c.bf16 %v1012_v42, %v1011_v41 }
 0x360   :  { %2026 = vtanh.f32 %v557_v61 }
 0x36a   :  { %v2027_v63 = vpop.eup %2026 }
 0x36b   :  { %1518 = vmatmul.mubr.f32.vlgmr.msra.gmra.mrb[10].mxu0 %v2027_v63 }
 0x36c   :  { %1892 = vmatpush3.bf16.msra.mxu0 %v2310_v1  ;;  %1587 = vmatprep.mubr.msk.f32.mxu0 %vm2167_vm8, %v2168_v29 }
 0x36d   :  { %1893 = vmatprep.subr.bf16.mxu0 %v2165_v53 }
 0x370   :  { %1895 = vmatpush3.bf16.msra.mxu0 %v2313_v6 }
 0x371   :  { %1896 = vmatprep.subr.bf16.mxu0 %v2165_v53 }
 0x374   :  { %1898 = vmatpush3.bf16.msra.mxu0 %v2317_v11 }
 0x375   :  { %1899 = vmatprep.subr.bf16.mxu0 %v2165_v53 }
 0x378   :  { %1901 = vmatpush3.bf16.msra.mxu0 %v2321_v16 }
 0x379   :  { %1902 = vmatprep.subr.bf16.mxu0 %v2165_v53 }
 0x37c   :  { %1904 = vmatpush3.bf16.msra.mxu0 %v2325_v19 }
 0x37d   :  { %1905 = vmatprep.subr.bf16.mxu0 %v2165_v53 }
 0x380   :  { %1907 = vmatpush3.bf16.msra.mxu0 %v2329_v22 }
 0x381   :  { %1908 = vmatprep.subr.bf16.mxu0 %v2165_v53 }
 0x384   :  { %1910 = vmatpush3.bf16.msra.mxu0 %v2333_v25 }
 0x385   :  { %1911 = vmatprep.subr.bf16.mxu0 %v2165_v53 }
 0x388   :  { %1913 = vmatpush3.bf16.msra.mxu0 %v2338_v28 }
 0x389   :  { %1938 = vmatprep.subr.bf16.mxu0 %v2165_v53 }
 0x43e   :  { %v626_v0 = vpop.f32.mrb[10].mxu0 }
 0x43f   :  { %v630_v2 = vadd.f32 %v626_v0, %v361_v49  ;;  %v1519_v3 = vpop.f32.mrb[11].mxu0 }
 0x441   :  { %2028 = vtanh.f32 %v630_v2 }
 0x44b   :  { %v2029_v4 = vpop.eup %2028 }
 0x44c   :  { %1553 = vmatmul.mubr.f32.vlgmr.msra.gmra.mrb[10].mxu1 %v2029_v4 }
 0x44d   :  { %1916 = vmatpush3.bf16.msra.mxu1 %v2310_v1  ;;  %1622 = vmatprep.mubr.msk.f32.mxu1 %vm2167_vm8, %v2168_v29 }
 0x44e   :  { %1917 = vmatprep.subr.bf16.mxu1 %v2165_v53 }
 0x451   :  { %1919 = vmatpush3.bf16.msra.mxu1 %v2313_v6 }
 0x452   :  { %1920 = vmatprep.subr.bf16.mxu1 %v2165_v53 }
 0x455   :  { %1922 = vmatpush3.bf16.msra.mxu1 %v2317_v11 }
 0x456   :  { %1923 = vmatprep.subr.bf16.mxu1 %v2165_v53 }
 0x459   :  { %1925 = vmatpush3.bf16.msra.mxu1 %v2321_v16 }
 0x45a   :  { %1926 = vmatprep.subr.bf16.mxu1 %v2165_v53 }
 0x45d   :  { %1928 = vmatpush3.bf16.msra.mxu1 %v2325_v19 }
 0x45e   :  { %1929 = vmatprep.subr.bf16.mxu1 %v2165_v53 }
 0x461   :  { %1931 = vmatpush3.bf16.msra.mxu1 %v2329_v22 }
 0x462   :  { %1932 = vmatprep.subr.bf16.mxu1 %v2165_v53 }
 0x465   :  { %1934 = vmatpush3.bf16.msra.mxu1 %v2333_v25 }
 0x466   :  { %1935 = vmatprep.subr.bf16.mxu1 %v2165_v53 }
 0x469   :  { %1937 = vmatpush3.bf16.msra.mxu1 %v2338_v28 }
 0x46a   :  { %1962 = vmatprep.subr.bf16.mxu1 %v2165_v53 }
 0x51f   :  { %v699_v5 = vpop.f32.mrb[10].mxu1 }
 0x520   :  { %v703_v7 = vadd.f32 %v699_v5, %v2384_v47  ;;  %v1554_v8 = vpop.f32.mrb[11].mxu1 }
 0x522   :  { %2030 = vtanh.f32 %v703_v7 }
 0x52c   :  { %v2031_v9 = vpop.eup %2030 }
 0x52d   :  { %1588 = vmatmul.mubr.f32.vlgmr.msra.gmra.mrb[12].mxu0 %v2031_v9 }
 0x52e   :  { %1940 = vmatpush3.bf16.msra.mxu0 %v2310_v1  ;;  %1657 = vmatprep.mubr.msk.f32.mxu0 %vm2167_vm8, %v2168_v29 }
 0x52f   :  { %1941 = vmatprep.subr.bf16.mxu0 %v2165_v53 }
 0x532   :  { %1943 = vmatpush3.bf16.msra.mxu0 %v2313_v6 }
 0x533   :  { %1944 = vmatprep.subr.bf16.mxu0 %v2165_v53 }
 0x536   :  { %1946 = vmatpush3.bf16.msra.mxu0 %v2317_v11 }
 0x537   :  { %1947 = vmatprep.subr.bf16.mxu0 %v2165_v53 }
 0x53a   :  { %1949 = vmatpush3.bf16.msra.mxu0 %v2321_v16 }
 0x53b   :  { %1950 = vmatprep.subr.bf16.mxu0 %v2165_v53 }
 0x53e   :  { %1952 = vmatpush3.bf16.msra.mxu0 %v2325_v19 }
 0x53f   :  { %1953 = vmatprep.subr.bf16.mxu0 %v2165_v53 }
 0x542   :  { %1955 = vmatpush3.bf16.msra.mxu0 %v2329_v22 }
 0x543   :  { %1956 = vmatprep.subr.bf16.mxu0 %v2165_v53 }
 0x546   :  { %1958 = vmatpush3.bf16.msra.mxu0 %v2333_v25 }
 0x547   :  { %1959 = vmatprep.subr.bf16.mxu0 %v2165_v53 }
 0x54a   :  { %1961 = vmatpush3.bf16.msra.mxu0 %v2338_v28 }
 0x54b   :  { %1986 = vmatprep.subr.bf16.mxu0 %v2165_v53 }
 0x600   :  { %v772_v10 = vpop.f32.mrb[12].mxu0 }
 0x601   :  { %v776_v12 = vadd.f32 %v772_v10, %v2388_v54  ;;  %v1589_v13 = vpop.f32.mrb[13].mxu0 }
 0x603   :  { %2032 = vtanh.f32 %v776_v12 }
 0x60d   :  { %v2033_v14 = vpop.eup %2032 }
 0x60e   :  { %1623 = vmatmul.mubr.f32.vlgmr.msra.gmra.mrb[12].mxu1 %v2033_v14 }
 0x60f   :  { %1964 = vmatpush3.bf16.msra.mxu1 %v2310_v1  ;;  %1692 = vmatprep.mubr.msk.f32.mxu1 %vm2167_vm8, %v2168_v29 }
 0x610   :  { %1965 = vmatprep.subr.bf16.mxu1 %v2165_v53 }
 0x613   :  { %1967 = vmatpush3.bf16.msra.mxu1 %v2313_v6 }
 0x614   :  { %1968 = vmatprep.subr.bf16.mxu1 %v2165_v53 }
 0x617   :  { %1970 = vmatpush3.bf16.msra.mxu1 %v2317_v11 }
 0x618   :  { %1971 = vmatprep.subr.bf16.mxu1 %v2165_v53 }
 0x61b   :  { %1973 = vmatpush3.bf16.msra.mxu1 %v2321_v16  ;;  %v997_v16 = vld [vmem:[#allocation9] sm:$0xff] }
 0x61c   :  { %1974 = vmatprep.subr.bf16.mxu1 %v2165_v53 }
 0x61f   :  { %1976 = vmatpush3.bf16.msra.mxu1 %v2325_v19  ;;  %v1987_v19 = vpack.c.bf16 %v998_v17, %v997_v16 }
 0x620   :  { %1977 = vmatprep.subr.bf16.mxu1 %v2165_v53 }
 0x623   :  { %1979 = vmatpush3.bf16.msra.mxu1 %v2329_v22  ;;  %v1001_v22 = vld [vmem:[#allocation9 + $0x20] sm:$0xff] }
 0x624   :  { %1980 = vmatprep.subr.bf16.mxu1 %v2165_v53  ;;  %v1993_v24 = vpack.c.bf16 %v1002_v23, %v1001_v22 }
 0x627   :  { %1982 = vmatpush3.bf16.msra.mxu1 %v2333_v25  ;;  %v1003_v25 = vld [vmem:[#allocation9 + $0x30] sm:$0xff] }
 0x628   :  { %1983 = vmatprep.subr.bf16.mxu1 %v2165_v53  ;;  %v1996_v27 = vpack.c.bf16 %v1004_v26, %v1003_v25 }
 0x62b   :  { %1985 = vmatpush3.bf16.msra.mxu1 %v2338_v28  ;;  %v1005_v28 = vld [vmem:[#allocation9 + $0x40] sm:$0xff] }
 0x6e1   :  { %v845_v1 = vpop.f32.mrb[12].mxu1 }
 0x6e2   :  { %v849_v6 = vadd.f32 %v845_v1, %v2386_v51  ;;  %v1624_v11 = vpop.f32.mrb[13].mxu1 }
 0x6e4   :  { %2034 = vtanh.f32 %v849_v6 }
 0x6ee   :  { %v2035_v15 = vpop.eup %2034 }
 0x6ef   :  { %1658 = vmatmul.mubr.f32.vlgmr.msra.gmra.mrb[14].mxu0 %v2035_v15 }
 0x6f0   :  { %1727 = vmatprep.mubr.msk.f32.mxu0 %vm2167_vm8, %v2168_v29  ;;  %1988 = vmatpush3.bf16.msra.mxu0 %v1987_v19  ;;  %v1006_v29 = vld [vmem:[#allocation9 + $0x48] sm:$0xff] }
 0x6f1   :  { %1989 = vmatprep.subr.bf16.mxu0 %v2165_v53  ;;  %v1999_v30 = vpack.c.bf16 %v1006_v29, %v1005_v28 }
 0x6f4   :  { %1991 = vmatpush3.bf16.msra.mxu0 %v1990_v21 }
 0x6f5   :  { %1992 = vmatprep.subr.bf16.mxu0 %v2165_v53 }
 0x6f8   :  { %1994 = vmatpush3.bf16.msra.mxu0 %v1993_v24 }
 0x6f9   :  { %1995 = vmatprep.subr.bf16.mxu0 %v2165_v53 }
 0x6fc   :  { %1997 = vmatpush3.bf16.msra.mxu0 %v1996_v27 }
 0x6fd   :  { %1998 = vmatprep.subr.bf16.mxu0 %v2165_v53 }
 0x700   :  { %2000 = vmatpush3.bf16.msra.mxu0 %v1999_v30 }
 0x701   :  { %2001 = vmatprep.subr.bf16.mxu0 %v2165_v53 }
 0x704   :  { %2003 = vmatpush3.bf16.msra.mxu0 %v2002_v37 }
 0x705   :  { %2004 = vmatprep.subr.bf16.mxu0 %v2165_v53 }
 0x708   :  { %2006 = vmatpush3.bf16.msra.mxu0 %v2005_v40 }
 0x709   :  { %2007 = vmatprep.subr.bf16.mxu0 %v2165_v53 }
 0x70c   :  { %2009 = vmatpush3.bf16.msra.mxu0 %v2008_v43 }
 0x7c2   :  { %v918_v31 = vpop.f32.mrb[14].mxu0 }
 0x7c3   :  { %v922_v32 = vadd.f32 %v918_v31, %v2392_v58  ;;  %v1659_v33 = vpop.f32.mrb[15].mxu0 }
 0x7c5   :  { %2036 = vtanh.f32 %v922_v32 }
 0x7cf   :  { %v2037_v34 = vpop.eup %2036 }
 0x7d0   :  { %1693 = vmatmul.mubr.f32.vlgmr.msra.gmra.mrb[14].mxu1 %v2037_v34 }
 0x8a3   :  { %v991_v44 = vpop.f32.mrb[14].mxu1 }
 0x8a4   :  { %v995_v45 = vadd.f32 %v991_v44, %v2390_v56  ;;  %v1694_v46 = vpop.f32.mrb[15].mxu1 }
 0x8a6   :  { %2038 = vtanh.f32 %v995_v45 }
 0x8b0   :  { %v2039_v47 = vpop.eup %2038 }
 0x8b1   :  { %1728 = vmatmul.mubr.f32.vlgmr.msra.gmra.mrb[16].mxu0 %v2039_v47 }
 0x984   :  { %v1086_v49 = vpop.f32.mrb[16].mxu0 }
 0x985   :  { %v1087_v50 = vadd.f32 %v1125_v48, %v1086_v49  ;;  %v1729_v51 = vpop.f32.mrb[17].mxu0 }
 0x987   :  { %1090 = vst [vmem:[#allocation11] sm:$0xff] %v1087_v50 }
 0x988   :  { %2139 = shalt.err (!%p2136_p8)
}
 0x989   :  { %s2140_s24 = scalar_lea.hbm %s2519_s7, 128 }
 0x98a   :  { %p2141_p9 = scmp.ne.s32.totalorder %s2519_s7, %s2140_s24  ;;  %p2144_p10 = scmp.lt.u32.totalorder %s2140_s24, %s2519_s7 }
 0x98c   :  { %p2146_p11 = pnand %p2144_p10, %p2141_p9 }
 0x98e   :  { %2149 = shalt.err (!%p2146_p11)
}
 0x98f   :  { %1100 = dma.vmem_to_hbm [thread:$0]  %s1098_s20, 128, %s2519_s7, [#allocation5]  }
 0x990   :  { %2156 = dma.done.wait [#allocation5], 128  }
 0x991   :  { %2157 = vsyncadd [#allocation5], 4294967168 }
 0x992   :  { %1104 = vsyncpa [#allocation4], 1 }
 0x993   :  { %1105 = vsyncpa [#allocation7], 1 }
 0x994   :  { %1106 = vsyncpa [#allocation10], 1 }
 0x995   :  { %1107 = vsyncpa [#allocation5], 1 }

// kernel: tpu_custom_call.1
= control target key start
LH: loop header
LB: loop body
LE: loop exit
PB: predicated region body
PF: predicated region fallthrough
CT: control target
= control target key end

     0   :  { %12 = vsyncpa [#allocation4], 0  ;;  %s2512_s0 = inlined_call_operand.vmem [shape: s32[1,64,1], index: 0, kind: input, shape index: {}]   ;;  %s2513_s1 = inlined_call_operand.hbm [shape: f32[128,128], index: 1, kind: input, shape index: {}]   ;;  %s2514_s2 = inlined_call_operand.hbm [shape: f32[128,128], index: 2, kind: input, shape index: {}]   ;;  %s2515_s3 = inlined_call_operand.hbm [shape: f32[128,128], index: 3, kind: input, shape index: {}]   ;;  %s2516_s4 = inlined_call_operand.vmem [shape: f32[1,128], index: 4, kind: input, shape index: {}]   ;;  %s2517_s5 = inlined_call_operand.hbm [shape: f32[128,128], index: 5, kind: input, shape index: {}]   ;;  %s2518_s6 = inlined_call_operand.vmem [shape: f32[1,128], index: 6, kind: input, shape index: {}]   ;;  %s2519_s7 = inlined_call_operand.hbm [shape: f32[8,128], index: 7, kind: output, shape index: {}]  }
   0x1   :  { %13 = vsyncpa [#allocation7], 0 }
   0x2   :  { %14 = vsyncpa [#allocation10], 0 }
   0x3   :  { %15 = vsyncpa [#allocation5], 0  ;;  %s2158_s24 = smov [#allocation6]   ;;  %s2159_s26 = smov [#allocation3]  }
   0x4   :  { %s35_s25 = sshll.u32 %s2158_s24, 4  ;;  %s23_s27 = sshll.u32 %s2159_s26, 4  ;;  %s36_s25 = int_to_ptr.vmem [resolvable:$true] %s35_s25  ;;  %s2210_s27 = int_to_ptr.vmem [resolvable:$true] %s23_s27 }
   0x5   :  { %s2040_s30 = scalar_lea.hbm %s2514_s2, 2048 }
   0x6   :  { %p2041_p0 = scmp.ne.s32.totalorder %s2514_s2, %s2040_s30  ;;  %p2044_p1 = scmp.lt.u32.totalorder %s2040_s30, %s2514_s2 }
   0x8   :  { %p2046_p2 = pnand %p2044_p1, %p2041_p0 }
   0xa   :  { %2049 = shalt.err (!%p2046_p2)
}
   0xb   :  { %s2050_s12 = scalar_lea.vmem %s36_s25, 2048  ;;  %p2055_p4 = scmp.lt.s32.totalorder %s36_s25, %s36_s25 }
   0xc   :  { %p2051_p3 = scmp.ne.s32.totalorder %s36_s25, %s2050_s12  ;;  %p2056_p5 = scmp.lt.s32.totalorder %s2050_s12, %s2050_s12 }
   0xe   :  { %p2057_p6 = por %p2056_p5, %p2055_p4 }
  0x10   :  { %p2058_p7 = pnand %p2057_p6, %p2051_p3 }
  0x12   :  { %2061 = shalt.err (!%p2058_p7)
}
  0x13   :  { %s2160_s13 = smov 128   ;;  %s2161_s14 = smov 8  }
  0x14   :  { %41 = dma.hbm_to_vmem [thread:$0]  %s2514_s2, 2048, %s36_s25, [#allocation7], %s2160_s13, %s2160_s13, %s2161_s14  }
  0x15   :  { %s2062_s19 = scalar_lea.hbm %s2513_s1, 2048 }
  0x16   :  { %p2063_p8 = scmp.ne.s32.totalorder %s2513_s1, %s2062_s19  ;;  %p2066_p9 = scmp.lt.u32.totalorder %s2062_s19, %s2513_s1 }
  0x18   :  { %p2068_p10 = pnand %p2066_p9, %p2063_p8 }
  0x1a   :  { %2071 = shalt.err (!%p2068_p10)
}
  0x1b   :  { %s2072_s24 = scalar_lea.vmem %s2210_s27, 2048  ;;  %p2077_p12 = scmp.lt.s32.totalorder %s2210_s27, %s2210_s27 }
  0x1c   :  { %p2073_p11 = scmp.ne.s32.totalorder %s2210_s27, %s2072_s24  ;;  %p2078_p13 = scmp.lt.s32.totalorder %s2072_s24, %s2072_s24 }
  0x1e   :  { %p2079_p0 = por %p2078_p13, %p2077_p12 }
  0x20   :  { %p2080_p1 = pnand %p2079_p0, %p2073_p11 }
  0x22   :  { %2083 = shalt.err (!%p2080_p1)
}
  0x23   :  { %29 = dma.hbm_to_vmem [thread:$0]  %s2513_s1, 2048, %s2210_s27, [#allocation4], %s2160_s13, %s2160_s13, %s2161_s14  }
  0x24   :  { %s2162_s26 = smov [#allocation8]   ;;  %s2163_s29 = smov [#allocation9]  }
  0x25   :  { %s47_s28 = sshll.u32 %s2162_s26, 4  ;;  %s61_s30 = sshll.u32 %s2163_s29, 4  ;;  %s48_s28 = int_to_ptr.vmem [resolvable:$true] %s47_s28  ;;  %s2247_s30 = int_to_ptr.vmem [resolvable:$true] %s61_s30 }
  0x26   :  { %s2084_s10 = scalar_lea.hbm %s2515_s3, 2048 }
  0x27   :  { %p2085_p2 = scmp.ne.s32.totalorder %s2515_s3, %s2084_s10  ;;  %p2088_p3 = scmp.lt.u32.totalorder %s2084_s10, %s2515_s3 }
  0x29   :  { %p2090_p4 = pnand %p2088_p3, %p2085_p2 }
  0x2b   :  { %2093 = shalt.err (!%p2090_p4)
}
  0x2c   :  { %s2094_s1 = scalar_lea.vmem %s48_s28, 2048  ;;  %p2099_p6 = scmp.lt.s32.totalorder %s48_s28, %s48_s28 }
  0x2d   :  { %p2095_p5 = scmp.ne.s32.totalorder %s48_s28, %s2094_s1  ;;  %p2100_p7 = scmp.lt.s32.totalorder %s2094_s1, %s2094_s1 }
  0x2f   :  { %p2101_p8 = por %p2100_p7, %p2099_p6 }
  0x31   :  { %p2102_p9 = pnand %p2101_p8, %p2095_p5 }
  0x33   :  { %2105 = shalt.err (!%p2102_p9)
}
  0x34   :  { %53 = dma.hbm_to_vmem [thread:$0]  %s2515_s3, 2048, %s48_s28, [#allocation7], %s2160_s13, %s2160_s13, %s2161_s14  }
  0x35   :  { %s2106_s20 = scalar_lea.hbm %s2517_s5, 2048 }
  0x36   :  { %p2107_p10 = scmp.ne.s32.totalorder %s2517_s5, %s2106_s20  ;;  %p2110_p11 = scmp.lt.u32.totalorder %s2106_s20, %s2517_s5 }
  0x38   :  { %p2112_p12 = pnand %p2110_p11, %p2107_p10 }
  0x3a   :  { %2115 = shalt.err (!%p2112_p12)
}
  0x3b   :  { %s2116_s2 = scalar_lea.vmem %s2247_s30, 2048  ;;  %p2121_p0 = scmp.lt.s32.totalorder %s2247_s30, %s2247_s30 }
  0x3c   :  { %p2117_p13 = scmp.ne.s32.totalorder %s2247_s30, %s2116_s2  ;;  %p2122_p1 = scmp.lt.s32.totalorder %s2116_s2, %s2116_s2 }
  0x3e   :  { %p2123_p2 = por %p2122_p1, %p2121_p0 }
  0x40   :  { %p2124_p3 = pnand %p2123_p2, %p2117_p13 }
  0x42   :  { %2127 = shalt.err (!%p2124_p3)
}
  0x43   :  { %67 = dma.hbm_to_vmem [thread:$0]  %s2517_s5, 2048, %s2247_s30, [#allocation10], %s2160_s13, %s2160_s13, %s2161_s14  }
  0x44   :  { %2150 = dma.done.wait [#allocation4], 2048  }
  0x45   :  { %2151 = vsyncadd [#allocation4], 4294965248 }
  0x46   :  { %2152 = dma.done.wait [#allocation7], 4096  }
  0x47   :  { %2153 = vsyncadd [#allocation7], 4294963200 }
  0x48   :  { %2154 = dma.done.wait [#allocation10], 2048  }
  0x49   :  { %2155 = vsyncadd [#allocation10], 4294965248  ;;  %v2164_v0 = vmov 0   ;;  %v82_v1 = vld [vmem:[%s2512_s0] sm:$0xff]  ;;  %v84_v2 = vld [vmem:[%s2512_s0 + $0x10] sm:$0xff]  ;;  %v2165_v53 = vmov 0.0|0.0   ;;  %v90_v58 = vlaneseq }
  0x4a   :  { %2022 = vset.pattern.permute.xlu0 %v2164_v0  ;;  %2023 = vset.pattern.permute.xlu1 %v2164_v0  ;;  %v83_v3 = vld [vmem:[%s2512_s0 + $0x8] sm:$0xff]  ;;  %v85_v4 = vld [vmem:[%s2512_s0 + $0x18] sm:$0xff]  ;;  %v140_v5 = vld [vmem:[#allocation3] sm:$0xff]  ;;  %v2166_v0 = vmov 1.0   ;;  %vm2167_vm8 = vmmov 0   ;;  %s2169_s19 = smov [#allocation11]  }
  0x4b   :  { %93 = vperm.xlu0 %2022, %v82_v1   ;;  %99 = vperm.xlu1 %2023, %v84_v2   ;;  %v141_v6 = vld [vmem:[#allocation3 + $0x8] sm:$0xff]  ;;  %v142_v8 = vld [vmem:[#allocation3 + $0x10] sm:$0xff]  ;;  %v143_v9 = vld [vmem:[#allocation3 + $0x18] sm:$0xff]  ;;  %v91_v59 = vand.u32 127, %v90_v58  ;;  %s1097_s20 = sshll.u32 %s2169_s19, 4  ;;  %s1098_s20 = int_to_ptr.vmem [resolvable:$true] %s1097_s20 }
  0x4c   :  { %v1730_v7 = vpack.c.bf16 %v141_v6, %v140_v5  ;;  %v1734_v10 = vpack.c.bf16 %v143_v9, %v142_v8  ;;  %v144_v11 = vld [vmem:[#allocation3 + $0x20] sm:$0xff]  ;;  %v145_v12 = vld [vmem:[#allocation3 + $0x28] sm:$0xff]  ;;  %v146_v16 = vld [vmem:[#allocation3 + $0x30] sm:$0xff]  ;;  %s2128_s21 = scalar_lea.vmem %s1098_s20, 128  ;;  %p2133_p5 = scmp.lt.s32.totalorder %s1098_s20, %s1098_s20 }
  0x4d   :  { %v86_v13 = vld [vmem:[%s2512_s0 + $0x20] sm:$0xff]  ;;  %v87_v14 = vld [vmem:[%s2512_s0 + $0x28] sm:$0xff]  ;;  %v1738_v15 = vpack.c.bf16 %v145_v12, %v144_v11  ;;  %v147_v17 = vld [vmem:[#allocation3 + $0x38] sm:$0xff]  ;;  %p2129_p4 = scmp.ne.s32.totalorder %s1098_s20, %s2128_s21  ;;  %p2134_p6 = scmp.lt.s32.totalorder %s2128_s21, %s2128_s21 }
  0x4e   :  { %1731 = vmatprep.subr.bf16.mxu0 %v1730_v7  ;;  %v88_v18 = vld [vmem:[%s2512_s0 + $0x30] sm:$0xff]  ;;  %v1742_v19 = vpack.c.bf16 %v147_v17, %v146_v16  ;;  %v148_v20 = vld [vmem:[#allocation3 + $0x40] sm:$0xff]  ;;  %v149_v21 = vld [vmem:[#allocation3 + $0x48] sm:$0xff] }
  0x4f   :  { %96 = vperm.xlu0 %2022, %v83_v3   ;;  %102 = vperm.xlu1 %2023, %v85_v4   ;;  %v89_v22 = vld [vmem:[%s2512_s0 + $0x38] sm:$0xff]  ;;  %v261_v23 = vld [vmem:[#allocation6] sm:$0xff]  ;;  %v262_v24 = vld [vmem:[#allocation6 + $0x8] sm:$0xff]  ;;  %v1746_v25 = vpack.c.bf16 %v149_v21, %v148_v20  ;;  %p2135_p7 = por %p2134_p6, %p2133_p5 }
  0x50   :  { %1733 = vmatpush3.bf16.msra.mxu0 %v1730_v7  ;;  %v1762_v26 = vpack.c.bf16 %v262_v24, %v261_v23  ;;  %v263_v27 = vld [vmem:[#allocation6 + $0x10] sm:$0xff]  ;;  %v151_v29 = vld [vmem:[#allocation3 + $0x58] sm:$0xff]  ;;  %v265_v32 = vld [vmem:[#allocation6 + $0x20] sm:$0xff] }
  0x51   :  { %1735 = vmatprep.subr.bf16.mxu0 %v1734_v10  ;;  %v150_v28 = vld [vmem:[#allocation3 + $0x50] sm:$0xff]  ;;  %v264_v30 = vld [vmem:[#allocation6 + $0x18] sm:$0xff]  ;;  %v266_v33 = vld [vmem:[#allocation6 + $0x28] sm:$0xff]  ;;  %p2136_p8 = pnand %p2135_p7, %p2129_p4 }
  0x52   :  { %1763 = vmatprep.subr.bf16.mxu1 %v1762_v26  ;;  %v1766_v31 = vpack.c.bf16 %v264_v30, %v263_v27  ;;  %v1750_v34 = vpack.c.bf16 %v151_v29, %v150_v28  ;;  %v152_v35 = vld [vmem:[#allocation3 + $0x60] sm:$0xff]  ;;  %v1770_v36 = vpack.c.bf16 %v266_v33, %v265_v32  ;;  %v153_v37 = vld [vmem:[#allocation3 + $0x68] sm:$0xff]  ;;  %v267_v38 = vld [vmem:[#allocation6 + $0x30] sm:$0xff]  ;;  %v2168_v29 = vmov 0.0  }
  0x53   :  { %105 = vperm.xlu0 %2022, %v86_v13   ;;  %108 = vperm.xlu1 %2023, %v87_v14   ;;  %v268_v39 = vld [vmem:[#allocation6 + $0x38] sm:$0xff]  ;;  %v1754_v40 = vpack.c.bf16 %v153_v37, %v152_v35  ;;  %v154_v41 = vld [vmem:[#allocation3 + $0x70] sm:$0xff]  ;;  %v269_v44 = vld [vmem:[#allocation6 + $0x40] sm:$0xff] }
  0x54   :  { %1737 = vmatpush3.bf16.msra.mxu0 %v1734_v10  ;;  %1765 = vmatpush3.bf16.msra.mxu1 %v1762_v26  ;;  %v1774_v42 = vpack.c.bf16 %v268_v39, %v267_v38  ;;  %v155_v43 = vld [vmem:[#allocation3 + $0x78] sm:$0xff]  ;;  %v270_v45 = vld [vmem:[#allocation6 + $0x48] sm:$0xff]  ;;  %v271_v48 = vld [vmem:[#allocation6 + $0x50] sm:$0xff] }
  0x55   :  { %1739 = vmatprep.subr.bf16.mxu0 %v1738_v15  ;;  %1767 = vmatprep.subr.bf16.mxu1 %v1766_v31  ;;  %v1758_v46 = vpack.c.bf16 %v155_v43, %v154_v41  ;;  %v1778_v47 = vpack.c.bf16 %v270_v45, %v269_v44  ;;  %v272_v49 = vld [vmem:[#allocation6 + $0x58] sm:$0xff]  ;;  %v273_v51 = vld [vmem:[#allocation6 + $0x60] sm:$0xff]  ;;  %v274_v52 = vld [vmem:[#allocation6 + $0x68] sm:$0xff] }
  0x56   :  { %v1782_v50 = vpack.c.bf16 %v272_v49, %v271_v48  ;;  %v1786_v54 = vpack.c.bf16 %v274_v52, %v273_v51  ;;  %v275_v55 = vld [vmem:[#allocation6 + $0x70] sm:$0xff]  ;;  %v276_v56 = vld [vmem:[#allocation6 + $0x78] sm:$0xff]  ;;  %v397_v62 = vld [vmem:[#allocation8] sm:$0xff] }
  0x57   :  { %111 = vperm.xlu0 %2022, %v88_v18   ;;  %114 = vperm.xlu1 %2023, %v89_v22   ;;  %v1790_v57 = vpack.c.bf16 %v276_v56, %v275_v55  ;;  %v398_v63 = vld [vmem:[#allocation8 + $0x8] sm:$0xff]  ;;  %v399_v4 = vld [vmem:[#allocation8 + $0x10] sm:$0xff]  ;;  %v400_v5 = vld [vmem:[#allocation8 + $0x18] sm:$0xff] }
  0x58   :  { %1741 = vmatpush3.bf16.msra.mxu0 %v1738_v15  ;;  %1769 = vmatpush3.bf16.msra.mxu1 %v1766_v31  ;;  %v2310_v1 = vpack.c.bf16 %v398_v63, %v397_v62  ;;  %v2313_v6 = vpack.c.bf16 %v400_v5, %v399_v4  ;;  %v401_v9 = vld [vmem:[#allocation8 + $0x20] sm:$0xff]  ;;  %v402_v10 = vld [vmem:[#allocation8 + $0x28] sm:$0xff]  ;;  %v403_v13 = vld [vmem:[#allocation8 + $0x30] sm:$0xff] }
  0x59   :  { %1743 = vmatprep.subr.bf16.mxu0 %v1742_v19  ;;  %1771 = vmatprep.subr.bf16.mxu1 %v1770_v36  ;;  %v2317_v11 = vpack.c.bf16 %v402_v10, %v401_v9  ;;  %v404_v14 = vld [vmem:[#allocation8 + $0x38] sm:$0xff]  ;;  %v405_v17 = vld [vmem:[#allocation8 + $0x40] sm:$0xff]  ;;  %v406_v18 = vld [vmem:[#allocation8 + $0x48] sm:$0xff] }
  0x5a   :  { %v2321_v16 = vpack.c.bf16 %v404_v14, %v403_v13  ;;  %v407_v20 = vld [vmem:[#allocation8 + $0x50] sm:$0xff]  ;;  %v408_v21 = vld [vmem:[#allocation8 + $0x58] sm:$0xff]  ;;  %v409_v23 = vld [vmem:[#allocation8 + $0x60] sm:$0xff] }
  0x5b   :  { %v2329_v22 = vpack.c.bf16 %v408_v21, %v407_v20  ;;  %v410_v24 = vld [vmem:[#allocation8 + $0x68] sm:$0xff]  ;;  %v411_v26 = vld [vmem:[#allocation8 + $0x70] sm:$0xff]  ;;  %v412_v27 = vld [vmem:[#allocation8 + $0x78] sm:$0xff] }
  0x5c   :  { %1745 = vmatpush3.bf16.msra.mxu0 %v1742_v19  ;;  %1773 = vmatpush3.bf16.msra.mxu1 %v1770_v36  ;;  %v2325_v19 = vpack.c.bf16 %v406_v18, %v405_v17  ;;  %v2338_v28 = vpack.c.bf16 %v412_v27, %v411_v26  ;;  %v998_v17 = vld [vmem:[#allocation9 + $0x8] sm:$0xff]  ;;  %v999_v18 = vld [vmem:[#allocation9 + $0x10] sm:$0xff]  ;;  %v1000_v20 = vld [vmem:[#allocation9 + $0x18] sm:$0xff] }
  0x5d   :  { %1747 = vmatprep.subr.bf16.mxu0 %v1746_v25  ;;  %1775 = vmatprep.subr.bf16.mxu1 %v1774_v42  ;;  %v1990_v21 = vpack.c.bf16 %v1000_v20, %v999_v18  ;;  %v1004_v26 = vld [vmem:[#allocation9 + $0x38] sm:$0xff] }
  0x60   :  { %1749 = vmatpush3.bf16.msra.mxu0 %v1746_v25  ;;  %1777 = vmatpush3.bf16.msra.mxu1 %v1774_v42  ;;  %v2333_v25 = vpack.c.bf16 %v410_v24, %v409_v23  ;;  %v1002_v23 = vld [vmem:[#allocation9 + $0x28] sm:$0xff] }
  0x61   :  { %1751 = vmatprep.subr.bf16.mxu0 %v1750_v34  ;;  %1779 = vmatprep.subr.bf16.mxu1 %v1778_v47 }
  0x64   :  { %1753 = vmatpush3.bf16.msra.mxu0 %v1750_v34  ;;  %1781 = vmatpush3.bf16.msra.mxu1 %v1778_v47 }
  0x65   :  { %1755 = vmatprep.subr.bf16.mxu0 %v1754_v40  ;;  %1783 = vmatprep.subr.bf16.mxu1 %v1782_v50 }
  0x68   :  { %1757 = vmatpush3.bf16.msra.mxu0 %v1754_v40  ;;  %1785 = vmatpush3.bf16.msra.mxu1 %v1782_v50  ;;  %v1124_v40 = vld [vmem:[%s2516_s4] ss:$0 sm:$0xff] }
  0x69   :  { %1759 = vmatprep.subr.bf16.mxu0 %v1758_v46  ;;  %1787 = vmatprep.subr.bf16.mxu1 %v1786_v54 }
  0x6c   :  { %1761 = vmatpush3.bf16.msra.mxu0 %v1758_v46  ;;  %1789 = vmatpush3.bf16.msra.mxu1 %v1786_v54 }
  0x6d   :  { %1794 = vmatprep.subr.bf16.mxu0 %v2165_v53  ;;  %1791 = vmatprep.subr.bf16.mxu1 %v1790_v57 }
  0x70   :  { %1793 = vmatpush3.bf16.msra.mxu1 %v1790_v57 }
  0x71   :  { %1818 = vmatprep.subr.bf16.mxu1 %v2165_v53 }
  0xca   :  { %v94_v60 = vpop.permute.xlu0 %93  ;;  %v100_v61 = vpop.permute.xlu1 %99 }
  0xcb   :  { %vm116_vm0 = vcmp.eq.s32.totalorder %v91_v59, %v94_v60  ;;  %vm118_vm1 = vcmp.eq.s32.totalorder %v91_v59, %v100_v61 }
  0xcc   :  { %1359 = vmatprep.mubr.msk.f32.mxu0 %vm116_vm0, %v2166_v0 }
  0xce   :  { %v97_v2 = vpop.permute.xlu0 %96  ;;  %v103_v3 = vpop.permute.xlu1 %102 }
  0xcf   :  { %vm117_vm2 = vcmp.eq.s32.totalorder %v91_v59, %v97_v2  ;;  %vm119_vm3 = vcmp.eq.s32.totalorder %v91_v59, %v103_v3 }
  0xd0   :  { %1360 = vmatmul.mubr.msk.f32.vlgmr.msra.gmra.mrb[0].mxu0 %vm117_vm2, %v2166_v0 }
  0xd1   :  { %1362 = vmatprep.mubr.msk.f32.mxu0 %vm118_vm1, %v2166_v0  ;;  %1796 = vmatpush3.bf16.msra.mxu0 %v2310_v1 }
  0xd2   :  { %v106_v7 = vpop.permute.xlu0 %105  ;;  %v109_v8 = vpop.permute.xlu1 %108  ;;  %1797 = vmatprep.subr.bf16.mxu0 %v2165_v53 }
  0xd3   :  { %vm120_vm4 = vcmp.eq.s32.totalorder %v91_v59, %v106_v7  ;;  %vm121_vm5 = vcmp.eq.s32.totalorder %v91_v59, %v109_v8 }
  0xd4   :  { %1363 = vmatmul.mubr.msk.f32.gmra.mrb[2].mxu0 %vm119_vm3, %v2166_v0 }
  0xd5   :  { %1365 = vmatprep.mubr.msk.f32.mxu0 %vm120_vm4, %v2166_v0  ;;  %1799 = vmatpush3.bf16.msra.mxu0 %v2313_v6 }
  0xd6   :  { %v112_v12 = vpop.permute.xlu0 %111  ;;  %1800 = vmatprep.subr.bf16.mxu0 %v2165_v53  ;;  %v115_v15 = vpop.permute.xlu1 %114 }
  0xd7   :  { %vm122_vm6 = vcmp.eq.s32.totalorder %v91_v59, %v112_v12  ;;  %vm123_vm7 = vcmp.eq.s32.totalorder %v91_v59, %v115_v15 }
  0xd8   :  { %1366 = vmatmul.mubr.msk.f32.gmra.mrb[4].mxu0 %vm121_vm5, %v2166_v0 }
  0xd9   :  { %1368 = vmatprep.mubr.msk.f32.mxu0 %vm122_vm6, %v2166_v0  ;;  %1802 = vmatpush3.bf16.msra.mxu0 %v2317_v11 }
  0xda   :  { %1803 = vmatprep.subr.bf16.mxu0 %v2165_v53 }
  0xdc   :  { %1369 = vmatmul.mubr.msk.f32.gmra.mrb[6].mxu0 %vm123_vm7, %v2166_v0 }
  0xdd   :  { %1805 = vmatpush3.bf16.msra.mxu0 %v2321_v16  ;;  %1447 = vmatprep.mubr.msk.f32.mxu0 %vm2167_vm8, %v2168_v29 }
  0xde   :  { %1806 = vmatprep.subr.bf16.mxu0 %v2165_v53 }
  0xe1   :  { %1808 = vmatpush3.bf16.msra.mxu0 %v2325_v19 }
  0xe2   :  { %1809 = vmatprep.subr.bf16.mxu0 %v2165_v53 }
  0xe5   :  { %1811 = vmatpush3.bf16.msra.mxu0 %v2329_v22 }
  0xe6   :  { %1812 = vmatprep.subr.bf16.mxu0 %v2165_v53 }
  0xe9   :  { %1814 = vmatpush3.bf16.msra.mxu0 %v2333_v25 }
  0xea   :  { %1815 = vmatprep.subr.bf16.mxu0 %v2165_v53 }
  0xed   :  { %1817 = vmatpush3.bf16.msra.mxu0 %v2338_v28 }
  0xee   :  { %1842 = vmatprep.subr.bf16.mxu0 %v2165_v53 }
  0xf0   :  { %1448 = vmatmul.mubr.f32.vlgmr.msra.gmra.mrb[8].mxu0 %v2168_v29 }
  0xf1   :  { %1844 = vmatpush3.bf16.msra.mxu0 %v2310_v1  ;;  %1517 = vmatprep.mubr.msk.f32.mxu0 %vm2167_vm8, %v2168_v29 }
  0xf2   :  { %1845 = vmatprep.subr.bf16.mxu0 %v2165_v53 }
  0xf5   :  { %1847 = vmatpush3.bf16.msra.mxu0 %v2313_v6 }
  0xf6   :  { %1848 = vmatprep.subr.bf16.mxu0 %v2165_v53 }
  0xf9   :  { %1850 = vmatpush3.bf16.msra.mxu0 %v2317_v11 }
  0xfa   :  { %1851 = vmatprep.subr.bf16.mxu0 %v2165_v53 }
  0xfd   :  { %1853 = vmatpush3.bf16.msra.mxu0 %v2321_v16 }
  0xfe   :  { %1854 = vmatprep.subr.bf16.mxu0 %v2165_v53 }
 0x101   :  { %1856 = vmatpush3.bf16.msra.mxu0 %v2325_v19 }
 0x102   :  { %1857 = vmatprep.subr.bf16.mxu0 %v2165_v53 }
 0x105   :  { %1859 = vmatpush3.bf16.msra.mxu0 %v2329_v22 }
 0x106   :  { %1860 = vmatprep.subr.bf16.mxu0 %v2165_v53 }
 0x109   :  { %1862 = vmatpush3.bf16.msra.mxu0 %v2333_v25 }
 0x10a   :  { %1863 = vmatprep.subr.bf16.mxu0 %v2165_v53 }
 0x10d   :  { %1865 = vmatpush3.bf16.msra.mxu0 %v2338_v28 }
 0x10e   :  { %1890 = vmatprep.subr.bf16.mxu0 %v2165_v53 }
 0x1a3   :  { %v1361_v30 = vpop.f32.mrb[0].mxu0 }
 0x1a4   :  { %v222_v31 = vpop.f32.mrb[1].mxu0 }
 0x1a5   :  { %1403 = vmatprep.mubr.f32.mxu1 %v222_v31 }
 0x1a6   :  { %1404 = vmatmul.mubr.f32.vlgmr.msra.gmra.mrb[0].mxu1 %v1361_v30 }
 0x1a7   :  { %v1364_v32 = vpop.f32.mrb[2].mxu0  ;;  %1820 = vmatpush3.bf16.msra.mxu1 %v2310_v1 }
 0x1a8   :  { %v232_v33 = vpop.f32.mrb[3].mxu0  ;;  %1821 = vmatprep.subr.bf16.mxu1 %v2165_v53 }
 0x1a9   :  { %1406 = vmatprep.mubr.f32.mxu1 %v232_v33 }
 0x1aa   :  { %1407 = vmatmul.mubr.f32.gmra.mrb[2].mxu1 %v1364_v32 }
 0x1ab   :  { %v1367_v34 = vpop.f32.mrb[4].mxu0  ;;  %1823 = vmatpush3.bf16.msra.mxu1 %v2313_v6 }
 0x1ac   :  { %v242_v35 = vpop.f32.mrb[5].mxu0  ;;  %1824 = vmatprep.subr.bf16.mxu1 %v2165_v53 }
 0x1ad   :  { %1409 = vmatprep.mubr.f32.mxu1 %v242_v35  ;;  %v1007_v35 = vld [vmem:[#allocation9 + $0x50] sm:$0xff] }
 0x1ae   :  { %1410 = vmatmul.mubr.f32.gmra.mrb[4].mxu1 %v1367_v34 }
 0x1af   :  { %v1370_v36 = vpop.f32.mrb[6].mxu0  ;;  %1826 = vmatpush3.bf16.msra.mxu1 %v2317_v11 }
 0x1b0   :  { %v252_v37 = vpop.f32.mrb[7].mxu0  ;;  %1827 = vmatprep.subr.bf16.mxu1 %v2165_v53 }
 0x1b1   :  { %1412 = vmatprep.mubr.f32.mxu1 %v252_v37 }
 0x1b2   :  { %1413 = vmatmul.mubr.f32.gmra.mrb[6].mxu1 %v1370_v36  ;;  %v1008_v36 = vld [vmem:[#allocation9 + $0x58] sm:$0xff] }
 0x1b3   :  { %1829 = vmatpush3.bf16.msra.mxu1 %v2321_v16  ;;  %1482 = vmatprep.mubr.msk.f32.mxu1 %vm2167_vm8, %v2168_v29  ;;  %v2002_v37 = vpack.c.bf16 %v1008_v36, %v1007_v35 }
 0x1b4   :  { %1830 = vmatprep.subr.bf16.mxu1 %v2165_v53 }
 0x1b7   :  { %1832 = vmatpush3.bf16.msra.mxu1 %v2325_v19 }
 0x1b8   :  { %1833 = vmatprep.subr.bf16.mxu1 %v2165_v53 }
 0x1bb   :  { %1835 = vmatpush3.bf16.msra.mxu1 %v2329_v22 }
 0x1bc   :  { %1836 = vmatprep.subr.bf16.mxu1 %v2165_v53 }
 0x1bf   :  { %1838 = vmatpush3.bf16.msra.mxu1 %v2333_v25 }
 0x1c0   :  { %1839 = vmatprep.subr.bf16.mxu1 %v2165_v53 }
 0x1c3   :  { %1841 = vmatpush3.bf16.msra.mxu1 %v2338_v28  ;;  %v480_v38 = vpop.f32.mrb[8].mxu0 }
 0x1c4   :  { %1866 = vmatprep.subr.bf16.mxu1 %v2165_v53  ;;  %v1449_v39 = vpop.f32.mrb[9].mxu0 }
 0x1c5   :  { %v1010_v39 = vld [vmem:[#allocation9 + $0x68] sm:$0xff] }
 0x279   :  { %v1405_v41 = vpop.f32.mrb[0].mxu1 }
 0x27a   :  { %v356_v42 = vadd.f32 %v1405_v41, %v1124_v40  ;;  %v350_v43 = vpop.f32.mrb[1].mxu1  ;;  %v1011_v41 = vld [vmem:[#allocation9 + $0x70] sm:$0xff] }
 0x27b   :  { %v351_v44 = vadd.f32 %v1124_v40, %v350_v43 }
 0x27d   :  { %v484_v45 = vadd.f32 %v480_v38, %v351_v44  ;;  %v1408_v46 = vpop.f32.mrb[2].mxu1  ;;  %v1009_v38 = vld [vmem:[#allocation9 + $0x60] sm:$0xff] }
 0x27e   :  { %v2384_v47 = vadd.f32 %v1408_v46, %v1124_v40  ;;  %v360_v48 = vpop.f32.mrb[3].mxu1 }
 0x27f   :  { %2024 = vtanh.f32 %v484_v45  ;;  %v361_v49 = vadd.f32 %v1124_v40, %v360_v48  ;;  %v1125_v48 = vld [vmem:[%s2518_s6] ss:$0 sm:$0xff] }
 0x281   :  { %v1411_v50 = vpop.f32.mrb[4].mxu1 }
 0x282   :  { %v2386_v51 = vadd.f32 %v1411_v50, %v1124_v40  ;;  %v370_v52 = vpop.f32.mrb[5].mxu1 }
 0x283   :  { %v2388_v54 = vadd.f32 %v1124_v40, %v370_v52 }
 0x285   :  { %v1414_v55 = vpop.f32.mrb[6].mxu1 }
 0x286   :  { %v2390_v56 = vadd.f32 %v1414_v55, %v1124_v40  ;;  %v380_v57 = vpop.f32.mrb[7].mxu1 }
 0x287   :  { %v2392_v58 = vadd.f32 %v1124_v40, %v380_v57  ;;  %v2005_v40 = vpack.c.bf16 %v1010_v39, %v1009_v38 }
 0x289   :  { %v2025_v59 = vpop.eup %2024 }
 0x28a   :  { %1483 = vmatmul.mubr.f32.vlgmr.msra.gmra.mrb[8].mxu1 %v2025_v59 }
 0x28b   :  { %1868 = vmatpush3.bf16.msra.mxu1 %v2310_v1  ;;  %1552 = vmatprep.mubr.msk.f32.mxu1 %vm2167_vm8, %v2168_v29 }
 0x28c   :  { %1869 = vmatprep.subr.bf16.mxu1 %v2165_v53 }
 0x28f   :  { %1871 = vmatpush3.bf16.msra.mxu1 %v2313_v6 }
 0x290   :  { %1872 = vmatprep.subr.bf16.mxu1 %v2165_v53 }
 0x293   :  { %1874 = vmatpush3.bf16.msra.mxu1 %v2317_v11 }
 0x294   :  { %1875 = vmatprep.subr.bf16.mxu1 %v2165_v53 }
 0x297   :  { %1877 = vmatpush3.bf16.msra.mxu1 %v2321_v16 }
 0x298   :  { %1878 = vmatprep.subr.bf16.mxu1 %v2165_v53 }
 0x29b   :  { %1880 = vmatpush3.bf16.msra.mxu1 %v2325_v19 }
 0x29c   :  { %1881 = vmatprep.subr.bf16.mxu1 %v2165_v53 }
 0x29f   :  { %1883 = vmatpush3.bf16.msra.mxu1 %v2329_v22 }
 0x2a0   :  { %1884 = vmatprep.subr.bf16.mxu1 %v2165_v53 }
 0x2a3   :  { %1886 = vmatpush3.bf16.msra.mxu1 %v2333_v25 }
 0x2a4   :  { %1887 = vmatprep.subr.bf16.mxu1 %v2165_v53 }
 0x2a7   :  { %1889 = vmatpush3.bf16.msra.mxu1 %v2338_v28 }
 0x2a8   :  { %1914 = vmatprep.subr.bf16.mxu1 %v2165_v53 }
 0x35d   :  { %v553_v60 = vpop.f32.mrb[8].mxu1 }
 0x35e   :  { %v557_v61 = vadd.f32 %v553_v60, %v356_v42  ;;  %v1484_v62 = vpop.f32.mrb[9].mxu1  ;;  %v1012_v42 = vld [vmem:[#allocation9 + $0x78] sm:$0xff] }
 0x35f   :  { %v2008_v43 = vpack.c.bf16 %v1012_v42, %v1011_v41 }
 0x360   :  { %2026 = vtanh.f32 %v557_v61 }
 0x36a   :  { %v2027_v63 = vpop.eup %2026 }
 0x36b   :  { %1518 = vmatmul.mubr.f32.vlgmr.msra.gmra.mrb[10].mxu0 %v2027_v63 }
 0x36c   :  { %1892 = vmatpush3.bf16.msra.mxu0 %v2310_v1  ;;  %1587 = vmatprep.mubr.msk.f32.mxu0 %vm2167_vm8, %v2168_v29 }
 0x36d   :  { %1893 = vmatprep.subr.bf16.mxu0 %v2165_v53 }
 0x370   :  { %1895 = vmatpush3.bf16.msra.mxu0 %v2313_v6 }
 0x371   :  { %1896 = vmatprep.subr.bf16.mxu0 %v2165_v53 }
 0x374   :  { %1898 = vmatpush3.bf16.msra.mxu0 %v2317_v11 }
 0x375   :  { %1899 = vmatprep.subr.bf16.mxu0 %v2165_v53 }
 0x378   :  { %1901 = vmatpush3.bf16.msra.mxu0 %v2321_v16 }
 0x379   :  { %1902 = vmatprep.subr.bf16.mxu0 %v2165_v53 }
 0x37c   :  { %1904 = vmatpush3.bf16.msra.mxu0 %v2325_v19 }
 0x37d   :  { %1905 = vmatprep.subr.bf16.mxu0 %v2165_v53 }
 0x380   :  { %1907 = vmatpush3.bf16.msra.mxu0 %v2329_v22 }
 0x381   :  { %1908 = vmatprep.subr.bf16.mxu0 %v2165_v53 }
 0x384   :  { %1910 = vmatpush3.bf16.msra.mxu0 %v2333_v25 }
 0x385   :  { %1911 = vmatprep.subr.bf16.mxu0 %v2165_v53 }
 0x388   :  { %1913 = vmatpush3.bf16.msra.mxu0 %v2338_v28 }
 0x389   :  { %1938 = vmatprep.subr.bf16.mxu0 %v2165_v53 }
 0x43e   :  { %v626_v0 = vpop.f32.mrb[10].mxu0 }
 0x43f   :  { %v630_v2 = vadd.f32 %v626_v0, %v361_v49  ;;  %v1519_v3 = vpop.f32.mrb[11].mxu0 }
 0x441   :  { %2028 = vtanh.f32 %v630_v2 }
 0x44b   :  { %v2029_v4 = vpop.eup %2028 }
 0x44c   :  { %1553 = vmatmul.mubr.f32.vlgmr.msra.gmra.mrb[10].mxu1 %v2029_v4 }
 0x44d   :  { %1916 = vmatpush3.bf16.msra.mxu1 %v2310_v1  ;;  %1622 = vmatprep.mubr.msk.f32.mxu1 %vm2167_vm8, %v2168_v29 }
 0x44e   :  { %1917 = vmatprep.subr.bf16.mxu1 %v2165_v53 }
 0x451   :  { %1919 = vmatpush3.bf16.msra.mxu1 %v2313_v6 }
 0x452   :  { %1920 = vmatprep.subr.bf16.mxu1 %v2165_v53 }
 0x455   :  { %1922 = vmatpush3.bf16.msra.mxu1 %v2317_v11 }
 0x456   :  { %1923 = vmatprep.subr.bf16.mxu1 %v2165_v53 }
 0x459   :  { %1925 = vmatpush3.bf16.msra.mxu1 %v2321_v16 }
 0x45a   :  { %1926 = vmatprep.subr.bf16.mxu1 %v2165_v53 }
 0x45d   :  { %1928 = vmatpush3.bf16.msra.mxu1 %v2325_v19 }
 0x45e   :  { %1929 = vmatprep.subr.bf16.mxu1 %v2165_v53 }
 0x461   :  { %1931 = vmatpush3.bf16.msra.mxu1 %v2329_v22 }
 0x462   :  { %1932 = vmatprep.subr.bf16.mxu1 %v2165_v53 }
 0x465   :  { %1934 = vmatpush3.bf16.msra.mxu1 %v2333_v25 }
 0x466   :  { %1935 = vmatprep.subr.bf16.mxu1 %v2165_v53 }
 0x469   :  { %1937 = vmatpush3.bf16.msra.mxu1 %v2338_v28 }
 0x46a   :  { %1962 = vmatprep.subr.bf16.mxu1 %v2165_v53 }
 0x51f   :  { %v699_v5 = vpop.f32.mrb[10].mxu1 }
 0x520   :  { %v703_v7 = vadd.f32 %v699_v5, %v2384_v47  ;;  %v1554_v8 = vpop.f32.mrb[11].mxu1 }
 0x522   :  { %2030 = vtanh.f32 %v703_v7 }
 0x52c   :  { %v2031_v9 = vpop.eup %2030 }
 0x52d   :  { %1588 = vmatmul.mubr.f32.vlgmr.msra.gmra.mrb[12].mxu0 %v2031_v9 }
 0x52e   :  { %1940 = vmatpush3.bf16.msra.mxu0 %v2310_v1  ;;  %1657 = vmatprep.mubr.msk.f32.mxu0 %vm2167_vm8, %v2168_v29 }
 0x52f   :  { %1941 = vmatprep.subr.bf16.mxu0 %v2165_v53 }
 0x532   :  { %1943 = vmatpush3.bf16.msra.mxu0 %v2313_v6 }
 0x533   :  { %1944 = vmatprep.subr.bf16.mxu0 %v2165_v53 }
 0x536   :  { %1946 = vmatpush3.bf16.msra.mxu0 %v2317_v11 }
 0x537   :  { %1947 = vmatprep.subr.bf16.mxu0 %v2165_v53 }
 0x53a   :  { %1949 = vmatpush3.bf16.msra.mxu0 %v2321_v16 }
 0x53b   :  { %1950 = vmatprep.subr.bf16.mxu0 %v2165_v53 }
 0x53e   :  { %1952 = vmatpush3.bf16.msra.mxu0 %v2325_v19 }
 0x53f   :  { %1953 = vmatprep.subr.bf16.mxu0 %v2165_v53 }
 0x542   :  { %1955 = vmatpush3.bf16.msra.mxu0 %v2329_v22 }
 0x543   :  { %1956 = vmatprep.subr.bf16.mxu0 %v2165_v53 }
 0x546   :  { %1958 = vmatpush3.bf16.msra.mxu0 %v2333_v25 }
 0x547   :  { %1959 = vmatprep.subr.bf16.mxu0 %v2165_v53 }
 0x54a   :  { %1961 = vmatpush3.bf16.msra.mxu0 %v2338_v28 }
 0x54b   :  { %1986 = vmatprep.subr.bf16.mxu0 %v2165_v53 }
 0x600   :  { %v772_v10 = vpop.f32.mrb[12].mxu0 }
 0x601   :  { %v776_v12 = vadd.f32 %v772_v10, %v2388_v54  ;;  %v1589_v13 = vpop.f32.mrb[13].mxu0 }
 0x603   :  { %2032 = vtanh.f32 %v776_v12 }
 0x60d   :  { %v2033_v14 = vpop.eup %2032 }
 0x60e   :  { %1623 = vmatmul.mubr.f32.vlgmr.msra.gmra.mrb[12].mxu1 %v2033_v14 }
 0x60f   :  { %1964 = vmatpush3.bf16.msra.mxu1 %v2310_v1  ;;  %1692 = vmatprep.mubr.msk.f32.mxu1 %vm2167_vm8, %v2168_v29 }
 0x610   :  { %1965 = vmatprep.subr.bf16.mxu1 %v2165_v53 }
 0x613   :  { %1967 = vmatpush3.bf16.msra.mxu1 %v2313_v6 }
 0x614   :  { %1968 = vmatprep.subr.bf16.mxu1 %v2165_v53 }
 0x617   :  { %1970 = vmatpush3.bf16.msra.mxu1 %v2317_v11 }
 0x618   :  { %1971 = vmatprep.subr.bf16.mxu1 %v2165_v53 }
 0x61b   :  { %1973 = vmatpush3.bf16.msra.mxu1 %v2321_v16  ;;  %v997_v16 = vld [vmem:[#allocation9] sm:$0xff] }
 0x61c   :  { %1974 = vmatprep.subr.bf16.mxu1 %v2165_v53 }
 0x61f   :  { %1976 = vmatpush3.bf16.msra.mxu1 %v2325_v19  ;;  %v1987_v19 = vpack.c.bf16 %v998_v17, %v997_v16 }
 0x620   :  { %1977 = vmatprep.subr.bf16.mxu1 %v2165_v53 }
 0x623   :  { %1979 = vmatpush3.bf16.msra.mxu1 %v2329_v22  ;;  %v1001_v22 = vld [vmem:[#allocation9 + $0x20] sm:$0xff] }
 0x624   :  { %1980 = vmatprep.subr.bf16.mxu1 %v2165_v53  ;;  %v1993_v24 = vpack.c.bf16 %v1002_v23, %v1001_v22 }
 0x627   :  { %1982 = vmatpush3.bf16.msra.mxu1 %v2333_v25  ;;  %v1003_v25 = vld [vmem:[#allocation9 + $0x30] sm:$0xff] }
 0x628   :  { %1983 = vmatprep.subr.bf16.mxu1 %v2165_v53  ;;  %v1996_v27 = vpack.c.bf16 %v1004_v26, %v1003_v25 }
 0x62b   :  { %1985 = vmatpush3.bf16.msra.mxu1 %v2338_v28  ;;  %v1005_v28 = vld [vmem:[#allocation9 + $0x40] sm:$0xff] }
 0x6e1   :  { %v845_v1 = vpop.f32.mrb[12].mxu1 }
 0x6e2   :  { %v849_v6 = vadd.f32 %v845_v1, %v2386_v51  ;;  %v1624_v11 = vpop.f32.mrb[13].mxu1 }
 0x6e4   :  { %2034 = vtanh.f32 %v849_v6 }
 0x6ee   :  { %v2035_v15 = vpop.eup %2034 }
 0x6ef   :  { %1658 = vmatmul.mubr.f32.vlgmr.msra.gmra.mrb[14].mxu0 %v2035_v15 }
 0x6f0   :  { %1727 = vmatprep.mubr.msk.f32.mxu0 %vm2167_vm8, %v2168_v29  ;;  %1988 = vmatpush3.bf16.msra.mxu0 %v1987_v19  ;;  %v1006_v29 = vld [vmem:[#allocation9 + $0x48] sm:$0xff] }
 0x6f1   :  { %1989 = vmatprep.subr.bf16.mxu0 %v2165_v53  ;;  %v1999_v30 = vpack.c.bf16 %v1006_v29, %v1005_v28 }
 0x6f4   :  { %1991 = vmatpush3.bf16.msra.mxu0 %v1990_v21 }
 0x6f5   :  { %1992 = vmatprep.subr.bf16.mxu0 %v2165_v53 }
 0x6f8   :  { %1994 = vmatpush3.bf16.msra.mxu0 %v1993_v24 }
 0x6f9   :  { %1995 = vmatprep.subr.bf16.mxu0 %v2165_v53 }
 0x6fc   :  { %1997 = vmatpush3.bf16.msra.mxu0 %v1996_v27 }
 0x6fd   :  { %1998 = vmatprep.subr.bf16.mxu0 %v2165_v53 }
 0x700   :  { %2000 = vmatpush3.bf16.msra.mxu0 %v1999_v30 }
 0x701   :  { %2001 = vmatprep.subr.bf16.mxu0 %v2165_v53 }
 0x704   :  { %2003 = vmatpush3.bf16.msra.mxu0 %v2002_v37 }
 0x705   :  { %2004 = vmatprep.subr.bf16.mxu0 %v2165_v53 }
 0x708   :  { %2006 = vmatpush3.bf16.msra.mxu0 %v2005_v40 }
 0x709   :  { %2007 = vmatprep.subr.bf16.mxu0 %v2165_v53 }
 0x70c   :  { %2009 = vmatpush3.bf16.msra.mxu0 %v2008_v43 }
 0x7c2   :  { %v918_v31 = vpop.f32.mrb[14].mxu0 }
 0x7c3   :  { %v922_v32 = vadd.f32 %v918_v31, %v2392_v58  ;;  %v1659_v33 = vpop.f32.mrb[15].mxu0 }
 0x7c5   :  { %2036 = vtanh.f32 %v922_v32 }
 0x7cf   :  { %v2037_v34 = vpop.eup %2036 }
 0x7d0   :  { %1693 = vmatmul.mubr.f32.vlgmr.msra.gmra.mrb[14].mxu1 %v2037_v34 }
 0x8a3   :  { %v991_v44 = vpop.f32.mrb[14].mxu1 }
 0x8a4   :  { %v995_v45 = vadd.f32 %v991_v44, %v2390_v56  ;;  %v1694_v46 = vpop.f32.mrb[15].mxu1 }
 0x8a6   :  { %2038 = vtanh.f32 %v995_v45 }
 0x8b0   :  { %v2039_v47 = vpop.eup %2038 }
 0x8b1   :  { %1728 = vmatmul.mubr.f32.vlgmr.msra.gmra.mrb[16].mxu0 %v2039_v47 }
 0x984   :  { %v1086_v49 = vpop.f32.mrb[16].mxu0 }
 0x985   :  { %v1087_v50 = vadd.f32 %v1125_v48, %v1086_v49  ;;  %v1729_v51 = vpop.f32.mrb[17].mxu0 }
 0x987   :  { %1090 = vst [vmem:[#allocation11] sm:$0xff] %v1087_v50 }
 0x988   :  { %2139 = shalt.err (!%p2136_p8)
}
 0x989   :  { %s2140_s24 = scalar_lea.hbm %s2519_s7, 128 }
 0x98a   :  { %p2141_p9 = scmp.ne.s32.totalorder %s2519_s7, %s2140_s24  ;;  %p2144_p10 = scmp.lt.u32.totalorder %s2140_s24, %s2519_s7 }
 0x98c   :  { %p2146_p11 = pnand %p2144_p10, %p2141_p9 }
 0x98e   :  { %2149 = shalt.err (!%p2146_p11)
}
 0x98f   :  { %1100 = dma.vmem_to_hbm [thread:$0]  %s1098_s20, 128, %s2519_s7, [#allocation5]  }
 0x990   :  { %2156 = dma.done.wait [#allocation5], 128  }
 0x991   :  { %2157 = vsyncadd [#allocation5], 4294967168 }
 0x992   :  { %1104 = vsyncpa [#allocation4], 1 }
 0x993   :  { %1105 = vsyncpa [#allocation7], 1 }
 0x994   :  { %1106 = vsyncpa [#allocation10], 1 }
 0x995   :  { %1107 = vsyncpa [#allocation5], 1 }

</bundles_post_ra>
